<compile_context>
chip_gen: v6e
topology: v6e:2x2x1
jax: 0.10.0
libtpu: 0.0.40
codegen_flags: <defaults>
</compile_context>

<pallas_src>
import jax
import jax.numpy as jnp
from jax.experimental import pallas as pl
from jax.experimental.pallas import tpu as pltpu


def _make_fp_kernel(bb, n, m, c0, c1, res_mode):
    assert res_mode in ("none", "identity", "conv")

    def kernel(xyz_ref, pxyz_ref, feats_ref, skip_ref,
               w1_ref, b1_ref, w2_ref, b2_ref, *rest):
        if res_mode == "conv":
            resw_ref, out_ref, cat_sc = rest
        else:
            resw_ref = None
            out_ref, cat_sc = rest

        lane_idx = jax.lax.broadcasted_iota(jnp.int32, (n, m), 1)

        # TODO(synk): for production point counts (m, n in the thousands) the
        # (n, m) distance/weight matrices need m-axis tiling with an online
        # top-3 merge and an explicit vmem_limit_bytes; at these shapes the
        # full matrices fit VMEM trivially.
        for b in range(bb):                      # static unroll over batch block
            xt = xyz_ref[b]                      # (3, m) source coords, coord-major
            p = pxyz_ref[b]                      # (n, 3) parent coords, point-major

            # squared norms via slice-square-adds (pure VPU, no XLU reductions)
            xx = (xt[0:1, :] * xt[0:1, :]
                  + xt[1:2, :] * xt[1:2, :]
                  + xt[2:3, :] * xt[2:3, :])     # (1, m)
            pp = (p[:, 0:1] * p[:, 0:1]
                  + p[:, 1:2] * p[:, 1:2]
                  + p[:, 2:3] * p[:, 2:3])       # (n, 1)

            # cross term via 3 broadcast FMAs (replaces the K=3 MXU matmul + x.T)
            cross = (p[:, 0:1] * xt[0:1, :]
                     + p[:, 1:2] * xt[1:2, :]
                     + p[:, 2:3] * xt[2:3, :])   # (n, m)

            d2 = jnp.maximum(pp + xx - 2.0 * cross, 0.0)

            # iterative 3-NN with in-loop weight-matrix accumulation
            work = d2
            wmat = jnp.zeros((n, m), jnp.float32)
            inv_sum = jnp.zeros((n, 1), jnp.float32)
            for _ in range(3):
                mn = jnp.min(work, axis=1, keepdims=True)          # (n, 1)
                cand = jnp.where(work == mn, lane_idx, jnp.int32(m))
                amin = jnp.min(cand, axis=1, keepdims=True)        # first-occurrence argmin
                onehot = (lane_idx == amin).astype(jnp.float32)    # (n, m)
                inv = 1.0 / (jnp.sqrt(mn) + 1e-8)                  # (n, 1)
                wmat = wmat + onehot * inv
                inv_sum = inv_sum + inv
                work = jnp.where(onehot > 0.0, jnp.float32(1e30), work)
            wmat = wmat * (1.0 / inv_sum)                          # normalized weights

            # three_interpolate: (c0, n), contract over m, no transposes
            interp = jax.lax.dot_general(
                feats_ref[b], wmat,
                dimension_numbers=(((1,), (1,)), ((), ())),
                preferred_element_type=jnp.float32)

            # lane-folded concat scratch: rows = [interp ; skip], lanes = b*n..(b+1)*n
            cat_sc[0:c0, b * n:(b + 1) * n] = interp
            cat_sc[c0:c0 + c1, b * n:(b + 1) * n] = skip_ref[b]

        # fused MLP over the whole (c0+c1, bb*n) slab: one W1 matmul, one W2 matmul
        cat = cat_sc[...]
        h = jnp.dot(w1_ref[...], cat, preferred_element_type=jnp.float32) + b1_ref[...]
        h = jnp.maximum(h, 0.0)
        h = jnp.dot(w2_ref[...], h, preferred_element_type=jnp.float32) + b2_ref[...]
        h = jnp.maximum(h, 0.0)

        # residual: interpolated feats are already resident in cat_sc[0:c0, :]
        if res_mode == "conv":
            h = h + jnp.dot(resw_ref[...], cat_sc[0:c0, :],
                            preferred_element_type=jnp.float32)
        elif res_mode == "identity":
            h = h + cat_sc[0:c0, :]

        out_ref[0] = h                                             # (c2, bb*n) dense store

    return kernel


def _pick_batch_block(bs, n):
    """Fold enough batch elements into the lane axis to approach >=128 lanes."""
    target = max(1, -(-128 // n))      # ceil(128 / n)
    bb = min(bs, target)
    while bs % bb != 0:
        bb -= 1
    return bb


def pointnet_fp_forward(xyz, parent_xyz, feats, skip_feats, params, *,
                        res=False, batch_block=None):
    bs, m, _ = xyz.shape
    _, n, _ = parent_xyz.shape
    c0 = feats.shape[1]
    c1 = skip_feats.shape[1]
    c2 = params["w1"].shape[0]

    if not res:
        res_mode = "none"
    elif c2 == c0:
        res_mode = "identity"          # nn.Identity() residual
    else:
        res_mode = "conv"              # 1x1 Conv1d residual (bias=False)

    bb = batch_block if batch_block is not None else _pick_batch_block(bs, n)
    assert bs % bb == 0
    nb = bs // bb

    xyz_t = jnp.transpose(xyz, (0, 2, 1))          # (bs, 3, m) coord-major source coords
    b1 = params["b1"].reshape(c2, 1)
    b2 = params["b2"].reshape(c2, 1)

    inputs = [xyz_t, parent_xyz, feats, skip_feats, params["w1"], b1, params["w2"], b2]
    in_specs = [
        pl.BlockSpec((bb, 3, m), lambda g: (g, 0, 0)),
        pl.BlockSpec((bb, n, 3), lambda g: (g, 0, 0)),
        pl.BlockSpec((bb, c0, m), lambda g: (g, 0, 0)),
        pl.BlockSpec((bb, c1, n), lambda g: (g, 0, 0)),
        pl.BlockSpec((c2, c0 + c1), lambda g: (0, 0)),
        pl.BlockSpec((c2, 1), lambda g: (0, 0)),
        pl.BlockSpec((c2, c2), lambda g: (0, 0)),
        pl.BlockSpec((c2, 1), lambda g: (0, 0)),
    ]
    scratch = [pltpu.VMEM((c0 + c1, bb * n), jnp.float32)]
    if res_mode == "conv":
        inputs.append(params["res_w"])
        in_specs.append(pl.BlockSpec((c2, c0), lambda g: (0, 0)))

    kernel = _make_fp_kernel(bb, n, m, c0, c1, res_mode)
    out = pl.pallas_call(
        kernel,
        out_shape=jax.ShapeDtypeStruct((nb, c2, bb * n), jnp.float32),
        grid_spec=pltpu.PrefetchScalarGridSpec(
            num_scalar_prefetch=0,
            grid=(nb,),
            in_specs=in_specs,
            out_specs=pl.BlockSpec((1, c2, bb * n), lambda g: (g, 0, 0)),
            scratch_shapes=scratch,
        ),
        compiler_params=pltpu.CompilerParams(
            dimension_semantics=("parallel",)),
    )(*inputs)

    # unfold the lane-packed batch slab back to (bs, c2, n) (layout plumbing only)
    return out.reshape(nb, c2, bb, n).transpose(0, 2, 1, 3).reshape(bs, c2, n)


def reference_forward(xyz, parent_xyz, feats, skip_feats, params, *, res=False):
    """Pure-JAX reference matching PointNetFPModule.forward semantics."""
    pp = jnp.sum(parent_xyz ** 2, -1)[:, :, None]
    xx = jnp.sum(xyz ** 2, -1)[:, None, :]
    cross = jnp.einsum("bnd,bmd->bnm", parent_xyz, xyz)
    d2 = jnp.maximum(pp + xx - 2.0 * cross, 0.0)                       # (bs, n, m)
    neg_top, idx = jax.lax.top_k(-d2, 3)
    dist = jnp.sqrt(-neg_top)                                          # (bs, n, 3)
    inv = 1.0 / (dist + 1e-8)
    w = inv / jnp.sum(inv, -1, keepdims=True)
    gathered = jnp.take_along_axis(
        feats[:, :, None, :], idx[:, None, :, :], axis=3)              # (bs, c0, n, 3)
    interp = jnp.sum(gathered * w[:, None, :, :], axis=3)              # (bs, c0, n)
    cat = jnp.concatenate([interp, skip_feats], axis=1)
    h = jnp.maximum(
        jnp.einsum("oc,bcn->bon", params["w1"], cat)
        + params["b1"][None, :, None], 0.0)
    h = jnp.maximum(
        jnp.einsum("oc,bcn->bon", params["w2"], h)
        + params["b2"][None, :, None], 0.0)
    if res:
        if params["w1"].shape[0] == feats.shape[1]:
            h = h + interp
        else:
            h = h + jnp.einsum("oc,bcn->bon", params["res_w"], interp)
    return h


if __name__ == "__main__":
    # Small deterministic configuration.
    bs, m, n = 2, 16, 32          # m source points, n parent points
    c0, c1, c2 = 16, 16, 32       # in_dim, skip_dim, out_dim
    res = True                    # exercise the res_conv branch (out_dim != in_dim)

    key = jax.random.PRNGKey(0)
    keys = jax.random.split(key, 9)

    xyz = jax.random.normal(keys[0], (bs, m, 3), jnp.float32)
    parent_xyz = jax.random.normal(keys[1], (bs, n, 3), jnp.float32)
    feats = jax.random.normal(keys[2], (bs, c0, m), jnp.float32)
    skip_feats = jax.random.normal(keys[3], (bs, c1, n), jnp.float32)

    # Deterministic synthetic parameters (Conv1d with kernel size 1 == matmul).
    params = {
        "w1": 0.1 * jax.random.normal(keys[4], (c2, c0 + c1), jnp.float32),
        "b1": 0.1 * jax.random.normal(keys[5], (c2,), jnp.float32),
        "w2": 0.1 * jax.random.normal(keys[6], (c2, c2), jnp.float32),
        "b2": 0.1 * jax.random.normal(keys[7], (c2,), jnp.float32),
        "res_w": 0.1 * jax.random.normal(keys[8], (c2, c0), jnp.float32),
    }

    out = pointnet_fp_forward(xyz, parent_xyz, feats, skip_feats, params, res=res)
    out = jax.block_until_ready(out)

    ref = reference_forward(xyz, parent_xyz, feats, skip_feats, params, res=res)
    ref = jax.block_until_ready(ref)

    assert out.shape == (bs, c2, n), out.shape
    assert jnp.allclose(out, ref, atol=1e-4, rtol=1e-3), (
        float(jnp.max(jnp.abs(out - ref))))

    print("KERNEL_OK")
</pallas_src>

<mosaic_0001>
module attributes {stable_mosaic.version = 11 : i64} {
  func.func @kernel(%arg0: i32, %arg1: memref<2x3x16xf32, #tpu.memory_space<vmem>>, %arg2: memref<2x32x3xf32, #tpu.memory_space<vmem>>, %arg3: memref<2x16x16xf32, #tpu.memory_space<vmem>>, %arg4: memref<2x16x32xf32, #tpu.memory_space<vmem>>, %arg5: memref<32x32xf32, #tpu.memory_space<vmem>>, %arg6: memref<32x1xf32, #tpu.memory_space<vmem>>, %arg7: memref<32x32xf32, #tpu.memory_space<vmem>>, %arg8: memref<32x1xf32, #tpu.memory_space<vmem>>, %arg9: memref<32x16xf32, #tpu.memory_space<vmem>>, %arg10: memref<1x32x64xf32, #tpu.memory_space<vmem>>, %arg11: memref<32x64xf32, #tpu.memory_space<vmem>>) attributes {dimension_semantics = [#tpu.dimension_semantics<parallel>], iteration_bounds = array<i64: 1>, scalar_prefetch = 0 : i64, scratch_operands = 1 : i64, tpu.core_type = #tpu.core_type<tc>, window_params = [{transform_indices = @transform_0, window_bounds = array<i64: 2, 3, 16>}, {transform_indices = @transform_1, window_bounds = array<i64: 2, 32, 3>}, {transform_indices = @transform_2, window_bounds = array<i64: 2, 16, 16>}, {transform_indices = @transform_3, window_bounds = array<i64: 2, 16, 32>}, {pipeline_mode = #tpu.pipeline_mode<synchronous>, transform_indices = @transform_4, window_bounds = array<i64: 32, 32>}, {pipeline_mode = #tpu.pipeline_mode<synchronous>, transform_indices = @transform_5, window_bounds = array<i64: 32, 1>}, {pipeline_mode = #tpu.pipeline_mode<synchronous>, transform_indices = @transform_6, window_bounds = array<i64: 32, 32>}, {pipeline_mode = #tpu.pipeline_mode<synchronous>, transform_indices = @transform_7, window_bounds = array<i64: 32, 1>}, {pipeline_mode = #tpu.pipeline_mode<synchronous>, transform_indices = @transform_8, window_bounds = array<i64: 32, 16>}, {transform_indices = @transform_9, window_bounds = array<i64: 1, 32, 64>}]} {
    %0 = tpu.iota {dimensions = array<i32: 1>} : vector<32x16xi32>
    %c0 = arith.constant 0 : index
    %c0_0 = arith.constant 0 : index
    %c0_1 = arith.constant 0 : index
    %1 = vector.load %arg1[%c0, %c0_0, %c0_1] : memref<2x3x16xf32, #tpu.memory_space<vmem>>, vector<1x3x16xf32>
    %2 = vector.shape_cast %1 : vector<1x3x16xf32> to vector<3x16xf32>
    %c0_2 = arith.constant 0 : index
    %c0_3 = arith.constant 0 : index
    %c0_4 = arith.constant 0 : index
    %3 = vector.load %arg2[%c0_2, %c0_3, %c0_4] : memref<2x32x3xf32, #tpu.memory_space<vmem>>, vector<1x32x3xf32>
    %4 = vector.shape_cast %3 : vector<1x32x3xf32> to vector<32x3xf32>
    %5 = vector.extract_strided_slice %2 {offsets = [0, 0], sizes = [1, 16], strides = [1, 1]} : vector<3x16xf32> to vector<1x16xf32>
    %6 = vector.extract_strided_slice %2 {offsets = [0, 0], sizes = [1, 16], strides = [1, 1]} : vector<3x16xf32> to vector<1x16xf32>
    %7 = arith.mulf %5, %6 : vector<1x16xf32>
    %8 = vector.extract_strided_slice %2 {offsets = [1, 0], sizes = [1, 16], strides = [1, 1]} : vector<3x16xf32> to vector<1x16xf32>
    %9 = vector.extract_strided_slice %2 {offsets = [1, 0], sizes = [1, 16], strides = [1, 1]} : vector<3x16xf32> to vector<1x16xf32>
    %10 = arith.mulf %8, %9 : vector<1x16xf32>
    %11 = arith.addf %7, %10 : vector<1x16xf32>
    %12 = vector.extract_strided_slice %2 {offsets = [2, 0], sizes = [1, 16], strides = [1, 1]} : vector<3x16xf32> to vector<1x16xf32>
    %13 = vector.extract_strided_slice %2 {offsets = [2, 0], sizes = [1, 16], strides = [1, 1]} : vector<3x16xf32> to vector<1x16xf32>
    %14 = arith.mulf %12, %13 : vector<1x16xf32>
    %15 = arith.addf %11, %14 : vector<1x16xf32>
    %16 = vector.extract_strided_slice %4 {offsets = [0, 0], sizes = [32, 1], strides = [1, 1]} : vector<32x3xf32> to vector<32x1xf32>
    %17 = vector.extract_strided_slice %4 {offsets = [0, 0], sizes = [32, 1], strides = [1, 1]} : vector<32x3xf32> to vector<32x1xf32>
    %18 = arith.mulf %16, %17 : vector<32x1xf32>
    %19 = vector.extract_strided_slice %4 {offsets = [0, 1], sizes = [32, 1], strides = [1, 1]} : vector<32x3xf32> to vector<32x1xf32>
    %20 = vector.extract_strided_slice %4 {offsets = [0, 1], sizes = [32, 1], strides = [1, 1]} : vector<32x3xf32> to vector<32x1xf32>
    %21 = arith.mulf %19, %20 : vector<32x1xf32>
    %22 = arith.addf %18, %21 : vector<32x1xf32>
    %23 = vector.extract_strided_slice %4 {offsets = [0, 2], sizes = [32, 1], strides = [1, 1]} : vector<32x3xf32> to vector<32x1xf32>
    %24 = vector.extract_strided_slice %4 {offsets = [0, 2], sizes = [32, 1], strides = [1, 1]} : vector<32x3xf32> to vector<32x1xf32>
    %25 = arith.mulf %23, %24 : vector<32x1xf32>
    %26 = arith.addf %22, %25 : vector<32x1xf32>
    %27 = vector.extract_strided_slice %4 {offsets = [0, 0], sizes = [32, 1], strides = [1, 1]} : vector<32x3xf32> to vector<32x1xf32>
    %28 = vector.extract_strided_slice %2 {offsets = [0, 0], sizes = [1, 16], strides = [1, 1]} : vector<3x16xf32> to vector<1x16xf32>
    %29 = vector.broadcast %27 : vector<32x1xf32> to vector<32x16xf32>
    %30 = vector.broadcast %28 : vector<1x16xf32> to vector<32x16xf32>
    %31 = arith.mulf %29, %30 : vector<32x16xf32>
    %32 = vector.extract_strided_slice %4 {offsets = [0, 1], sizes = [32, 1], strides = [1, 1]} : vector<32x3xf32> to vector<32x1xf32>
    %33 = vector.extract_strided_slice %2 {offsets = [1, 0], sizes = [1, 16], strides = [1, 1]} : vector<3x16xf32> to vector<1x16xf32>
    %34 = vector.broadcast %32 : vector<32x1xf32> to vector<32x16xf32>
    %35 = vector.broadcast %33 : vector<1x16xf32> to vector<32x16xf32>
    %36 = arith.mulf %34, %35 : vector<32x16xf32>
    %37 = arith.addf %31, %36 : vector<32x16xf32>
    %38 = vector.extract_strided_slice %4 {offsets = [0, 2], sizes = [32, 1], strides = [1, 1]} : vector<32x3xf32> to vector<32x1xf32>
    %39 = vector.extract_strided_slice %2 {offsets = [2, 0], sizes = [1, 16], strides = [1, 1]} : vector<3x16xf32> to vector<1x16xf32>
    %40 = vector.broadcast %38 : vector<32x1xf32> to vector<32x16xf32>
    %41 = vector.broadcast %39 : vector<1x16xf32> to vector<32x16xf32>
    %42 = arith.mulf %40, %41 : vector<32x16xf32>
    %43 = arith.addf %37, %42 : vector<32x16xf32>
    %44 = vector.broadcast %26 : vector<32x1xf32> to vector<32x16xf32>
    %45 = vector.broadcast %15 : vector<1x16xf32> to vector<32x16xf32>
    %46 = arith.addf %44, %45 : vector<32x16xf32>
    %cst = arith.constant 2.000000e+00 : f32
    %47 = vector.broadcast %cst : f32 to vector<32x16xf32>
    %48 = arith.mulf %47, %43 : vector<32x16xf32>
    %49 = arith.subf %46, %48 : vector<32x16xf32>
    %cst_5 = arith.constant 0.000000e+00 : f32
    %50 = vector.broadcast %cst_5 : f32 to vector<32x16xf32>
    %51 = arith.maximumf %49, %50 : vector<32x16xf32>
    %cst_6 = arith.constant 0.000000e+00 : f32
    %52 = vector.broadcast %cst_6 : f32 to vector<32x16xf32>
    %cst_7 = arith.constant 0.000000e+00 : f32
    %53 = vector.broadcast %cst_7 : f32 to vector<32x1xf32>
    %cst_8 = arith.constant dense<0x7F800000> : vector<32xf32>
    %54 = vector.multi_reduction <minimumf>, %51, %cst_8 [1] : vector<32x16xf32> to vector<32xf32>
    %55 = vector.shape_cast %54 : vector<32xf32> to vector<32x1xf32>
    %56 = vector.broadcast %55 : vector<32x1xf32> to vector<32x16xf32>
    %57 = arith.cmpf oeq, %51, %56 : vector<32x16xf32>
    %c16_i32 = arith.constant 16 : i32
    %58 = vector.broadcast %c16_i32 : i32 to vector<32x16xi32>
    %59 = arith.select %57, %0, %58 : vector<32x16xi1>, vector<32x16xi32>
    %cst_9 = arith.constant dense<2147483647> : vector<32xi32>
    %60 = vector.multi_reduction <minsi>, %59, %cst_9 [1] : vector<32x16xi32> to vector<32xi32>
    %61 = vector.shape_cast %60 : vector<32xi32> to vector<32x1xi32>
    %62 = vector.broadcast %61 : vector<32x1xi32> to vector<32x16xi32>
    %63 = arith.cmpi eq, %0, %62 : vector<32x16xi32>
    %64 = arith.extui %63 : vector<32x16xi1> to vector<32x16xi32>
    %65 = arith.sitofp %64 : vector<32x16xi32> to vector<32x16xf32>
    %66 = math.sqrt %55 : vector<32x1xf32>
    %cst_10 = arith.constant 9.99999993E-9 : f32
    %67 = vector.broadcast %cst_10 : f32 to vector<32x1xf32>
    %68 = arith.addf %66, %67 : vector<32x1xf32>
    %cst_11 = arith.constant 1.000000e+00 : f32
    %69 = vector.broadcast %cst_11 : f32 to vector<32x1xf32>
    %70 = arith.divf %69, %68 : vector<32x1xf32>
    %71 = vector.broadcast %70 : vector<32x1xf32> to vector<32x16xf32>
    %72 = arith.mulf %65, %71 : vector<32x16xf32>
    %73 = arith.addf %52, %72 : vector<32x16xf32>
    %74 = arith.addf %53, %70 : vector<32x1xf32>
    %cst_12 = arith.constant 0.000000e+00 : f32
    %75 = vector.broadcast %cst_12 : f32 to vector<32x16xf32>
    %76 = arith.cmpf ogt, %65, %75 : vector<32x16xf32>
    %cst_13 = arith.constant 1.000000e+30 : f32
    %77 = vector.broadcast %cst_13 : f32 to vector<32x16xf32>
    %78 = arith.select %76, %77, %51 : vector<32x16xi1>, vector<32x16xf32>
    %cst_14 = arith.constant dense<0x7F800000> : vector<32xf32>
    %79 = vector.multi_reduction <minimumf>, %78, %cst_14 [1] : vector<32x16xf32> to vector<32xf32>
    %80 = vector.shape_cast %79 : vector<32xf32> to vector<32x1xf32>
    %81 = vector.broadcast %80 : vector<32x1xf32> to vector<32x16xf32>
    %82 = arith.cmpf oeq, %78, %81 : vector<32x16xf32>
    %c16_i32_15 = arith.constant 16 : i32
    %83 = vector.broadcast %c16_i32_15 : i32 to vector<32x16xi32>
    %84 = arith.select %82, %0, %83 : vector<32x16xi1>, vector<32x16xi32>
    %cst_16 = arith.constant dense<2147483647> : vector<32xi32>
    %85 = vector.multi_reduction <minsi>, %84, %cst_16 [1] : vector<32x16xi32> to vector<32xi32>
    %86 = vector.shape_cast %85 : vector<32xi32> to vector<32x1xi32>
    %87 = vector.broadcast %86 : vector<32x1xi32> to vector<32x16xi32>
    %88 = arith.cmpi eq, %0, %87 : vector<32x16xi32>
    %89 = arith.extui %88 : vector<32x16xi1> to vector<32x16xi32>
    %90 = arith.sitofp %89 : vector<32x16xi32> to vector<32x16xf32>
    %91 = math.sqrt %80 : vector<32x1xf32>
    %cst_17 = arith.constant 9.99999993E-9 : f32
    %92 = vector.broadcast %cst_17 : f32 to vector<32x1xf32>
    %93 = arith.addf %91, %92 : vector<32x1xf32>
    %cst_18 = arith.constant 1.000000e+00 : f32
    %94 = vector.broadcast %cst_18 : f32 to vector<32x1xf32>
    %95 = arith.divf %94, %93 : vector<32x1xf32>
    %96 = vector.broadcast %95 : vector<32x1xf32> to vector<32x16xf32>
    %97 = arith.mulf %90, %96 : vector<32x16xf32>
    %98 = arith.addf %73, %97 : vector<32x16xf32>
    %99 = arith.addf %74, %95 : vector<32x1xf32>
    %cst_19 = arith.constant 0.000000e+00 : f32
    %100 = vector.broadcast %cst_19 : f32 to vector<32x16xf32>
    %101 = arith.cmpf ogt, %90, %100 : vector<32x16xf32>
    %cst_20 = arith.constant 1.000000e+30 : f32
    %102 = vector.broadcast %cst_20 : f32 to vector<32x16xf32>
    %103 = arith.select %101, %102, %78 : vector<32x16xi1>, vector<32x16xf32>
    %cst_21 = arith.constant dense<0x7F800000> : vector<32xf32>
    %104 = vector.multi_reduction <minimumf>, %103, %cst_21 [1] : vector<32x16xf32> to vector<32xf32>
    %105 = vector.shape_cast %104 : vector<32xf32> to vector<32x1xf32>
    %106 = vector.broadcast %105 : vector<32x1xf32> to vector<32x16xf32>
    %107 = arith.cmpf oeq, %103, %106 : vector<32x16xf32>
    %c16_i32_22 = arith.constant 16 : i32
    %108 = vector.broadcast %c16_i32_22 : i32 to vector<32x16xi32>
    %109 = arith.select %107, %0, %108 : vector<32x16xi1>, vector<32x16xi32>
    %cst_23 = arith.constant dense<2147483647> : vector<32xi32>
    %110 = vector.multi_reduction <minsi>, %109, %cst_23 [1] : vector<32x16xi32> to vector<32xi32>
    %111 = vector.shape_cast %110 : vector<32xi32> to vector<32x1xi32>
    %112 = vector.broadcast %111 : vector<32x1xi32> to vector<32x16xi32>
    %113 = arith.cmpi eq, %0, %112 : vector<32x16xi32>
    %114 = arith.extui %113 : vector<32x16xi1> to vector<32x16xi32>
    %115 = arith.sitofp %114 : vector<32x16xi32> to vector<32x16xf32>
    %116 = math.sqrt %105 : vector<32x1xf32>
    %cst_24 = arith.constant 9.99999993E-9 : f32
    %117 = vector.broadcast %cst_24 : f32 to vector<32x1xf32>
    %118 = arith.addf %116, %117 : vector<32x1xf32>
    %cst_25 = arith.constant 1.000000e+00 : f32
    %119 = vector.broadcast %cst_25 : f32 to vector<32x1xf32>
    %120 = arith.divf %119, %118 : vector<32x1xf32>
    %121 = vector.broadcast %120 : vector<32x1xf32> to vector<32x16xf32>
    %122 = arith.mulf %115, %121 : vector<32x16xf32>
    %123 = arith.addf %98, %122 : vector<32x16xf32>
    %124 = arith.addf %99, %120 : vector<32x1xf32>
    %cst_26 = arith.constant 1.000000e+00 : f32
    %125 = vector.broadcast %cst_26 : f32 to vector<32x1xf32>
    %126 = arith.divf %125, %124 : vector<32x1xf32>
    %127 = vector.broadcast %126 : vector<32x1xf32> to vector<32x16xf32>
    %128 = arith.mulf %123, %127 : vector<32x16xf32>
    %c0_27 = arith.constant 0 : index
    %c0_28 = arith.constant 0 : index
    %c0_29 = arith.constant 0 : index
    %129 = vector.load %arg3[%c0_27, %c0_28, %c0_29] : memref<2x16x16xf32, #tpu.memory_space<vmem>>, vector<1x16x16xf32>
    %130 = vector.shape_cast %129 : vector<1x16x16xf32> to vector<16x16xf32>
    %cst_30 = arith.constant dense<0.000000e+00> : vector<16x32xf32>
    %131 = tpu.matmul %130, %128, %cst_30 {dimension_numbers = #tpu.dot_dimension_numbers<[1], [1], [0], [0], [0, 0, 1, 0], [], []>} : vector<16x16xf32>, vector<32x16xf32>, vector<16x32xf32> -> vector<16x32xf32>
    %c0_31 = arith.constant 0 : index
    %c0_32 = arith.constant 0 : index
    %132 = vector.load %arg11[%c0_31, %c0_32] : memref<32x64xf32, #tpu.memory_space<vmem>>, vector<16x32xf32>
    tpu.vector_store %arg11[%c0_31, %c0_32], %131 {strides = array<i32>} : memref<32x64xf32, #tpu.memory_space<vmem>>, vector<16x32xf32>,
    %c0_33 = arith.constant 0 : index
    %c0_34 = arith.constant 0 : index
    %c0_35 = arith.constant 0 : index
    %133 = vector.load %arg4[%c0_33, %c0_34, %c0_35] : memref<2x16x32xf32, #tpu.memory_space<vmem>>, vector<1x16x32xf32>
    %134 = vector.shape_cast %133 : vector<1x16x32xf32> to vector<16x32xf32>
    %c16 = arith.constant 16 : index
    %c0_36 = arith.constant 0 : index
    %135 = vector.load %arg11[%c16, %c0_36] : memref<32x64xf32, #tpu.memory_space<vmem>>, vector<16x32xf32>
    tpu.vector_store %arg11[%c16, %c0_36], %134 {strides = array<i32>} : memref<32x64xf32, #tpu.memory_space<vmem>>, vector<16x32xf32>,
    %c1 = arith.constant 1 : index
    %c0_37 = arith.constant 0 : index
    %c0_38 = arith.constant 0 : index
    %136 = vector.load %arg1[%c1, %c0_37, %c0_38] : memref<2x3x16xf32, #tpu.memory_space<vmem>>, vector<1x3x16xf32>
    %137 = vector.shape_cast %136 : vector<1x3x16xf32> to vector<3x16xf32>
    %c1_39 = arith.constant 1 : index
    %c0_40 = arith.constant 0 : index
    %c0_41 = arith.constant 0 : index
    %138 = vector.load %arg2[%c1_39, %c0_40, %c0_41] : memref<2x32x3xf32, #tpu.memory_space<vmem>>, vector<1x32x3xf32>
    %139 = vector.shape_cast %138 : vector<1x32x3xf32> to vector<32x3xf32>
    %140 = vector.extract_strided_slice %137 {offsets = [0, 0], sizes = [1, 16], strides = [1, 1]} : vector<3x16xf32> to vector<1x16xf32>
    %141 = vector.extract_strided_slice %137 {offsets = [0, 0], sizes = [1, 16], strides = [1, 1]} : vector<3x16xf32> to vector<1x16xf32>
    %142 = arith.mulf %140, %141 : vector<1x16xf32>
    %143 = vector.extract_strided_slice %137 {offsets = [1, 0], sizes = [1, 16], strides = [1, 1]} : vector<3x16xf32> to vector<1x16xf32>
    %144 = vector.extract_strided_slice %137 {offsets = [1, 0], sizes = [1, 16], strides = [1, 1]} : vector<3x16xf32> to vector<1x16xf32>
    %145 = arith.mulf %143, %144 : vector<1x16xf32>
    %146 = arith.addf %142, %145 : vector<1x16xf32>
    %147 = vector.extract_strided_slice %137 {offsets = [2, 0], sizes = [1, 16], strides = [1, 1]} : vector<3x16xf32> to vector<1x16xf32>
    %148 = vector.extract_strided_slice %137 {offsets = [2, 0], sizes = [1, 16], strides = [1, 1]} : vector<3x16xf32> to vector<1x16xf32>
    %149 = arith.mulf %147, %148 : vector<1x16xf32>
    %150 = arith.addf %146, %149 : vector<1x16xf32>
    %151 = vector.extract_strided_slice %139 {offsets = [0, 0], sizes = [32, 1], strides = [1, 1]} : vector<32x3xf32> to vector<32x1xf32>
    %152 = vector.extract_strided_slice %139 {offsets = [0, 0], sizes = [32, 1], strides = [1, 1]} : vector<32x3xf32> to vector<32x1xf32>
    %153 = arith.mulf %151, %152 : vector<32x1xf32>
    %154 = vector.extract_strided_slice %139 {offsets = [0, 1], sizes = [32, 1], strides = [1, 1]} : vector<32x3xf32> to vector<32x1xf32>
    %155 = vector.extract_strided_slice %139 {offsets = [0, 1], sizes = [32, 1], strides = [1, 1]} : vector<32x3xf32> to vector<32x1xf32>
    %156 = arith.mulf %154, %155 : vector<32x1xf32>
    %157 = arith.addf %153, %156 : vector<32x1xf32>
    %158 = vector.extract_strided_slice %139 {offsets = [0, 2], sizes = [32, 1], strides = [1, 1]} : vector<32x3xf32> to vector<32x1xf32>
    %159 = vector.extract_strided_slice %139 {offsets = [0, 2], sizes = [32, 1], strides = [1, 1]} : vector<32x3xf32> to vector<32x1xf32>
    %160 = arith.mulf %158, %159 : vector<32x1xf32>
    %161 = arith.addf %157, %160 : vector<32x1xf32>
    %162 = vector.extract_strided_slice %139 {offsets = [0, 0], sizes = [32, 1], strides = [1, 1]} : vector<32x3xf32> to vector<32x1xf32>
    %163 = vector.extract_strided_slice %137 {offsets = [0, 0], sizes = [1, 16], strides = [1, 1]} : vector<3x16xf32> to vector<1x16xf32>
    %164 = vector.broadcast %162 : vector<32x1xf32> to vector<32x16xf32>
    %165 = vector.broadcast %163 : vector<1x16xf32> to vector<32x16xf32>
    %166 = arith.mulf %164, %165 : vector<32x16xf32>
    %167 = vector.extract_strided_slice %139 {offsets = [0, 1], sizes = [32, 1], strides = [1, 1]} : vector<32x3xf32> to vector<32x1xf32>
    %168 = vector.extract_strided_slice %137 {offsets = [1, 0], sizes = [1, 16], strides = [1, 1]} : vector<3x16xf32> to vector<1x16xf32>
    %169 = vector.broadcast %167 : vector<32x1xf32> to vector<32x16xf32>
    %170 = vector.broadcast %168 : vector<1x16xf32> to vector<32x16xf32>
    %171 = arith.mulf %169, %170 : vector<32x16xf32>
    %172 = arith.addf %166, %171 : vector<32x16xf32>
    %173 = vector.extract_strided_slice %139 {offsets = [0, 2], sizes = [32, 1], strides = [1, 1]} : vector<32x3xf32> to vector<32x1xf32>
    %174 = vector.extract_strided_slice %137 {offsets = [2, 0], sizes = [1, 16], strides = [1, 1]} : vector<3x16xf32> to vector<1x16xf32>
    %175 = vector.broadcast %173 : vector<32x1xf32> to vector<32x16xf32>
    %176 = vector.broadcast %174 : vector<1x16xf32> to vector<32x16xf32>
    %177 = arith.mulf %175, %176 : vector<32x16xf32>
    %178 = arith.addf %172, %177 : vector<32x16xf32>
    %179 = vector.broadcast %161 : vector<32x1xf32> to vector<32x16xf32>
    %180 = vector.broadcast %150 : vector<1x16xf32> to vector<32x16xf32>
    %181 = arith.addf %179, %180 : vector<32x16xf32>
    %cst_42 = arith.constant 2.000000e+00 : f32
    %182 = vector.broadcast %cst_42 : f32 to vector<32x16xf32>
    %183 = arith.mulf %182, %178 : vector<32x16xf32>
    %184 = arith.subf %181, %183 : vector<32x16xf32>
    %cst_43 = arith.constant 0.000000e+00 : f32
    %185 = vector.broadcast %cst_43 : f32 to vector<32x16xf32>
    %186 = arith.maximumf %184, %185 : vector<32x16xf32>
    %cst_44 = arith.constant 0.000000e+00 : f32
    %187 = vector.broadcast %cst_44 : f32 to vector<32x16xf32>
    %cst_45 = arith.constant 0.000000e+00 : f32
    %188 = vector.broadcast %cst_45 : f32 to vector<32x1xf32>
    %cst_46 = arith.constant dense<0x7F800000> : vector<32xf32>
    %189 = vector.multi_reduction <minimumf>, %186, %cst_46 [1] : vector<32x16xf32> to vector<32xf32>
    %190 = vector.shape_cast %189 : vector<32xf32> to vector<32x1xf32>
    %191 = vector.broadcast %190 : vector<32x1xf32> to vector<32x16xf32>
    %192 = arith.cmpf oeq, %186, %191 : vector<32x16xf32>
    %c16_i32_47 = arith.constant 16 : i32
    %193 = vector.broadcast %c16_i32_47 : i32 to vector<32x16xi32>
    %194 = arith.select %192, %0, %193 : vector<32x16xi1>, vector<32x16xi32>
    %cst_48 = arith.constant dense<2147483647> : vector<32xi32>
    %195 = vector.multi_reduction <minsi>, %194, %cst_48 [1] : vector<32x16xi32> to vector<32xi32>
    %196 = vector.shape_cast %195 : vector<32xi32> to vector<32x1xi32>
    %197 = vector.broadcast %196 : vector<32x1xi32> to vector<32x16xi32>
    %198 = arith.cmpi eq, %0, %197 : vector<32x16xi32>
    %199 = arith.extui %198 : vector<32x16xi1> to vector<32x16xi32>
    %200 = arith.sitofp %199 : vector<32x16xi32> to vector<32x16xf32>
    %201 = math.sqrt %190 : vector<32x1xf32>
    %cst_49 = arith.constant 9.99999993E-9 : f32
    %202 = vector.broadcast %cst_49 : f32 to vector<32x1xf32>
    %203 = arith.addf %201, %202 : vector<32x1xf32>
    %cst_50 = arith.constant 1.000000e+00 : f32
    %204 = vector.broadcast %cst_50 : f32 to vector<32x1xf32>
    %205 = arith.divf %204, %203 : vector<32x1xf32>
    %206 = vector.broadcast %205 : vector<32x1xf32> to vector<32x16xf32>
    %207 = arith.mulf %200, %206 : vector<32x16xf32>
    %208 = arith.addf %187, %207 : vector<32x16xf32>
    %209 = arith.addf %188, %205 : vector<32x1xf32>
    %cst_51 = arith.constant 0.000000e+00 : f32
    %210 = vector.broadcast %cst_51 : f32 to vector<32x16xf32>
    %211 = arith.cmpf ogt, %200, %210 : vector<32x16xf32>
    %cst_52 = arith.constant 1.000000e+30 : f32
    %212 = vector.broadcast %cst_52 : f32 to vector<32x16xf32>
    %213 = arith.select %211, %212, %186 : vector<32x16xi1>, vector<32x16xf32>
    %cst_53 = arith.constant dense<0x7F800000> : vector<32xf32>
    %214 = vector.multi_reduction <minimumf>, %213, %cst_53 [1] : vector<32x16xf32> to vector<32xf32>
    %215 = vector.shape_cast %214 : vector<32xf32> to vector<32x1xf32>
    %216 = vector.broadcast %215 : vector<32x1xf32> to vector<32x16xf32>
    %217 = arith.cmpf oeq, %213, %216 : vector<32x16xf32>
    %c16_i32_54 = arith.constant 16 : i32
    %218 = vector.broadcast %c16_i32_54 : i32 to vector<32x16xi32>
    %219 = arith.select %217, %0, %218 : vector<32x16xi1>, vector<32x16xi32>
    %cst_55 = arith.constant dense<2147483647> : vector<32xi32>
    %220 = vector.multi_reduction <minsi>, %219, %cst_55 [1] : vector<32x16xi32> to vector<32xi32>
    %221 = vector.shape_cast %220 : vector<32xi32> to vector<32x1xi32>
    %222 = vector.broadcast %221 : vector<32x1xi32> to vector<32x16xi32>
    %223 = arith.cmpi eq, %0, %222 : vector<32x16xi32>
    %224 = arith.extui %223 : vector<32x16xi1> to vector<32x16xi32>
    %225 = arith.sitofp %224 : vector<32x16xi32> to vector<32x16xf32>
    %226 = math.sqrt %215 : vector<32x1xf32>
    %cst_56 = arith.constant 9.99999993E-9 : f32
    %227 = vector.broadcast %cst_56 : f32 to vector<32x1xf32>
    %228 = arith.addf %226, %227 : vector<32x1xf32>
    %cst_57 = arith.constant 1.000000e+00 : f32
    %229 = vector.broadcast %cst_57 : f32 to vector<32x1xf32>
    %230 = arith.divf %229, %228 : vector<32x1xf32>
    %231 = vector.broadcast %230 : vector<32x1xf32> to vector<32x16xf32>
    %232 = arith.mulf %225, %231 : vector<32x16xf32>
    %233 = arith.addf %208, %232 : vector<32x16xf32>
    %234 = arith.addf %209, %230 : vector<32x1xf32>
    %cst_58 = arith.constant 0.000000e+00 : f32
    %235 = vector.broadcast %cst_58 : f32 to vector<32x16xf32>
    %236 = arith.cmpf ogt, %225, %235 : vector<32x16xf32>
    %cst_59 = arith.constant 1.000000e+30 : f32
    %237 = vector.broadcast %cst_59 : f32 to vector<32x16xf32>
    %238 = arith.select %236, %237, %213 : vector<32x16xi1>, vector<32x16xf32>
    %cst_60 = arith.constant dense<0x7F800000> : vector<32xf32>
    %239 = vector.multi_reduction <minimumf>, %238, %cst_60 [1] : vector<32x16xf32> to vector<32xf32>
    %240 = vector.shape_cast %239 : vector<32xf32> to vector<32x1xf32>
    %241 = vector.broadcast %240 : vector<32x1xf32> to vector<32x16xf32>
    %242 = arith.cmpf oeq, %238, %241 : vector<32x16xf32>
    %c16_i32_61 = arith.constant 16 : i32
    %243 = vector.broadcast %c16_i32_61 : i32 to vector<32x16xi32>
    %244 = arith.select %242, %0, %243 : vector<32x16xi1>, vector<32x16xi32>
    %cst_62 = arith.constant dense<2147483647> : vector<32xi32>
    %245 = vector.multi_reduction <minsi>, %244, %cst_62 [1] : vector<32x16xi32> to vector<32xi32>
    %246 = vector.shape_cast %245 : vector<32xi32> to vector<32x1xi32>
    %247 = vector.broadcast %246 : vector<32x1xi32> to vector<32x16xi32>
    %248 = arith.cmpi eq, %0, %247 : vector<32x16xi32>
    %249 = arith.extui %248 : vector<32x16xi1> to vector<32x16xi32>
    %250 = arith.sitofp %249 : vector<32x16xi32> to vector<32x16xf32>
    %251 = math.sqrt %240 : vector<32x1xf32>
    %cst_63 = arith.constant 9.99999993E-9 : f32
    %252 = vector.broadcast %cst_63 : f32 to vector<32x1xf32>
    %253 = arith.addf %251, %252 : vector<32x1xf32>
    %cst_64 = arith.constant 1.000000e+00 : f32
    %254 = vector.broadcast %cst_64 : f32 to vector<32x1xf32>
    %255 = arith.divf %254, %253 : vector<32x1xf32>
    %256 = vector.broadcast %255 : vector<32x1xf32> to vector<32x16xf32>
    %257 = arith.mulf %250, %256 : vector<32x16xf32>
    %258 = arith.addf %233, %257 : vector<32x16xf32>
    %259 = arith.addf %234, %255 : vector<32x1xf32>
    %cst_65 = arith.constant 1.000000e+00 : f32
    %260 = vector.broadcast %cst_65 : f32 to vector<32x1xf32>
    %261 = arith.divf %260, %259 : vector<32x1xf32>
    %262 = vector.broadcast %261 : vector<32x1xf32> to vector<32x16xf32>
    %263 = arith.mulf %258, %262 : vector<32x16xf32>
    %c1_66 = arith.constant 1 : index
    %c0_67 = arith.constant 0 : index
    %c0_68 = arith.constant 0 : index
    %264 = vector.load %arg3[%c1_66, %c0_67, %c0_68] : memref<2x16x16xf32, #tpu.memory_space<vmem>>, vector<1x16x16xf32>
    %265 = vector.shape_cast %264 : vector<1x16x16xf32> to vector<16x16xf32>
    %cst_69 = arith.constant dense<0.000000e+00> : vector<16x32xf32>
    %266 = tpu.matmul %265, %263, %cst_69 {dimension_numbers = #tpu.dot_dimension_numbers<[1], [1], [0], [0], [0, 0, 1, 0], [], []>} : vector<16x16xf32>, vector<32x16xf32>, vector<16x32xf32> -> vector<16x32xf32>
    %c0_70 = arith.constant 0 : index
    %c32 = arith.constant 32 : index
    %267 = vector.load %arg11[%c0_70, %c32] : memref<32x64xf32, #tpu.memory_space<vmem>>, vector<16x32xf32>
    tpu.vector_store %arg11[%c0_70, %c32], %266 {strides = array<i32>} : memref<32x64xf32, #tpu.memory_space<vmem>>, vector<16x32xf32>,
    %c1_71 = arith.constant 1 : index
    %c0_72 = arith.constant 0 : index
    %c0_73 = arith.constant 0 : index
    %268 = vector.load %arg4[%c1_71, %c0_72, %c0_73] : memref<2x16x32xf32, #tpu.memory_space<vmem>>, vector<1x16x32xf32>
    %269 = vector.shape_cast %268 : vector<1x16x32xf32> to vector<16x32xf32>
    %c16_74 = arith.constant 16 : index
    %c32_75 = arith.constant 32 : index
    %270 = vector.load %arg11[%c16_74, %c32_75] : memref<32x64xf32, #tpu.memory_space<vmem>>, vector<16x32xf32>
    tpu.vector_store %arg11[%c16_74, %c32_75], %269 {strides = array<i32>} : memref<32x64xf32, #tpu.memory_space<vmem>>, vector<16x32xf32>,
    %c0_76 = arith.constant 0 : index
    %c0_77 = arith.constant 0 : index
    %271 = vector.load %arg11[%c0_76, %c0_77] : memref<32x64xf32, #tpu.memory_space<vmem>>, vector<32x64xf32>
    %c0_78 = arith.constant 0 : index
    %c0_79 = arith.constant 0 : index
    %272 = vector.load %arg5[%c0_78, %c0_79] : memref<32x32xf32, #tpu.memory_space<vmem>>, vector<32x32xf32>
    %cst_80 = arith.constant dense<0.000000e+00> : vector<32x64xf32>
    %273 = tpu.matmul %272, %271, %cst_80 {dimension_numbers = #tpu.dot_dimension_numbers<[1], [0], [0], [1], [0, 0, 1, 1], [], []>} : vector<32x32xf32>, vector<32x64xf32>, vector<32x64xf32> -> vector<32x64xf32>
    %c0_81 = arith.constant 0 : index
    %c0_82 = arith.constant 0 : index
    %274 = vector.load %arg6[%c0_81, %c0_82] : memref<32x1xf32, #tpu.memory_space<vmem>>, vector<32x1xf32>
    %275 = vector.broadcast %274 : vector<32x1xf32> to vector<32x64xf32>
    %276 = arith.addf %273, %275 : vector<32x64xf32>
    %cst_83 = arith.constant 0.000000e+00 : f32
    %277 = vector.broadcast %cst_83 : f32 to vector<32x64xf32>
    %278 = arith.maximumf %276, %277 : vector<32x64xf32>
    %c0_84 = arith.constant 0 : index
    %c0_85 = arith.constant 0 : index
    %279 = vector.load %arg7[%c0_84, %c0_85] : memref<32x32xf32, #tpu.memory_space<vmem>>, vector<32x32xf32>
    %cst_86 = arith.constant dense<0.000000e+00> : vector<32x64xf32>
    %280 = tpu.matmul %279, %278, %cst_86 {dimension_numbers = #tpu.dot_dimension_numbers<[1], [0], [0], [1], [0, 0, 1, 1], [], []>} : vector<32x32xf32>, vector<32x64xf32>, vector<32x64xf32> -> vector<32x64xf32>
    %c0_87 = arith.constant 0 : index
    %c0_88 = arith.constant 0 : index
    %281 = vector.load %arg8[%c0_87, %c0_88] : memref<32x1xf32, #tpu.memory_space<vmem>>, vector<32x1xf32>
    %282 = vector.broadcast %281 : vector<32x1xf32> to vector<32x64xf32>
    %283 = arith.addf %280, %282 : vector<32x64xf32>
    %cst_89 = arith.constant 0.000000e+00 : f32
    %284 = vector.broadcast %cst_89 : f32 to vector<32x64xf32>
    %285 = arith.maximumf %283, %284 : vector<32x64xf32>
    %c0_90 = arith.constant 0 : index
    %c0_91 = arith.constant 0 : index
    %286 = vector.load %arg9[%c0_90, %c0_91] : memref<32x16xf32, #tpu.memory_space<vmem>>, vector<32x16xf32>
    %c0_92 = arith.constant 0 : index
    %c0_93 = arith.constant 0 : index
    %287 = vector.load %arg11[%c0_92, %c0_93] : memref<32x64xf32, #tpu.memory_space<vmem>>, vector<16x64xf32>
    %cst_94 = arith.constant dense<0.000000e+00> : vector<32x64xf32>
    %288 = tpu.matmul %286, %287, %cst_94 {dimension_numbers = #tpu.dot_dimension_numbers<[1], [0], [0], [1], [0, 0, 1, 1], [], []>} : vector<32x16xf32>, vector<16x64xf32>, vector<32x64xf32> -> vector<32x64xf32>
    %289 = arith.addf %285, %288 : vector<32x64xf32>
    %c0_95 = arith.constant 0 : index
    %c0_96 = arith.constant 0 : index
    %c0_97 = arith.constant 0 : index
    %290 = vector.load %arg10[%c0_95, %c0_96, %c0_97] : memref<1x32x64xf32, #tpu.memory_space<vmem>>, vector<1x32x64xf32>
    %291 = vector.shape_cast %290 : vector<1x32x64xf32> to vector<32x64xf32>
    %292 = vector.shape_cast %289 : vector<32x64xf32> to vector<1x32x64xf32>
    tpu.vector_store %arg10[%c0_95, %c0_96, %c0_97], %292 {strides = array<i32>} : memref<1x32x64xf32, #tpu.memory_space<vmem>>, vector<1x32x64xf32>,
    return
  }
  func.func @transform_0(%arg0: i32) -> (i32, i32, i32) {
    %c0_i32 = arith.constant 0 : i32
    %c0_i32_0 = arith.constant 0 : i32
    %c0_i32_1 = arith.constant 0 : i32
    return %arg0, %c0_i32, %c0_i32_0 : i32, i32, i32
  }
  func.func @transform_1(%arg0: i32) -> (i32, i32, i32) {
    %c0_i32 = arith.constant 0 : i32
    %c0_i32_0 = arith.constant 0 : i32
    %c0_i32_1 = arith.constant 0 : i32
    return %arg0, %c0_i32, %c0_i32_0 : i32, i32, i32
  }
  func.func @transform_2(%arg0: i32) -> (i32, i32, i32) {
    %c0_i32 = arith.constant 0 : i32
    %c0_i32_0 = arith.constant 0 : i32
    %c0_i32_1 = arith.constant 0 : i32
    return %arg0, %c0_i32, %c0_i32_0 : i32, i32, i32
  }
  func.func @transform_3(%arg0: i32) -> (i32, i32, i32) {
    %c0_i32 = arith.constant 0 : i32
    %c0_i32_0 = arith.constant 0 : i32
    %c0_i32_1 = arith.constant 0 : i32
    return %arg0, %c0_i32, %c0_i32_0 : i32, i32, i32
  }
  func.func @transform_4(%arg0: i32) -> (i32, i32) {
    %c0_i32 = arith.constant 0 : i32
    %c0_i32_0 = arith.constant 0 : i32
    %c0_i32_1 = arith.constant 0 : i32
    return %c0_i32, %c0_i32_0 : i32, i32
  }
  func.func @transform_5(%arg0: i32) -> (i32, i32) {
    %c0_i32 = arith.constant 0 : i32
    %c0_i32_0 = arith.constant 0 : i32
    %c0_i32_1 = arith.constant 0 : i32
    return %c0_i32, %c0_i32_0 : i32, i32
  }
  func.func @transform_6(%arg0: i32) -> (i32, i32) {
    %c0_i32 = arith.constant 0 : i32
    %c0_i32_0 = arith.constant 0 : i32
    %c0_i32_1 = arith.constant 0 : i32
    return %c0_i32, %c0_i32_0 : i32, i32
  }
  func.func @transform_7(%arg0: i32) -> (i32, i32) {
    %c0_i32 = arith.constant 0 : i32
    %c0_i32_0 = arith.constant 0 : i32
    %c0_i32_1 = arith.constant 0 : i32
    return %c0_i32, %c0_i32_0 : i32, i32
  }
  func.func @transform_8(%arg0: i32) -> (i32, i32) {
    %c0_i32 = arith.constant 0 : i32
    %c0_i32_0 = arith.constant 0 : i32
    %c0_i32_1 = arith.constant 0 : i32
    return %c0_i32, %c0_i32_0 : i32, i32
  }
  func.func @transform_9(%arg0: i32) -> (i32, i32, i32) {
    %c0_i32 = arith.constant 0 : i32
    %c0_i32_0 = arith.constant 0 : i32
    %c0_i32_1 = arith.constant 0 : i32
    return %arg0, %c0_i32, %c0_i32_0 : i32, i32, i32
  }
}

</mosaic_0001>

<bundles_post_ra>
// kernel: tpu_custom_call.1
= control target key start
LH: loop header
LB: loop body
LE: loop exit
PB: predicated region body
PF: predicated region fallthrough
CT: control target
= control target key end

     0   :  { %v2245_v4 = vmov 1   ;;  %v2246_v5 = vmov 0   ;;  %s3253_s0 = inlined_call_operand.vmem [shape: f32[2,3,16], index: 0, kind: input, shape index: {}]   ;;  %s3254_s1 = inlined_call_operand.vmem [shape: f32[2,32,3], index: 1, kind: input, shape index: {}]   ;;  %s3255_s2 = inlined_call_operand.vmem [shape: f32[2,16,16], index: 2, kind: input, shape index: {}]   ;;  %s3256_s3 = inlined_call_operand.vmem [shape: f32[2,16,32], index: 3, kind: input, shape index: {}]   ;;  %s3257_s4 = inlined_call_operand.vmem [shape: f32[32,32], index: 4, kind: input, shape index: {}]   ;;  %s3258_s5 = inlined_call_operand.vmem [shape: f32[32,1], index: 5, kind: input, shape index: {}]   ;;  %s3259_s6 = inlined_call_operand.vmem [shape: f32[32,32], index: 6, kind: input, shape index: {}]   ;;  %s3260_s7 = inlined_call_operand.vmem [shape: f32[32,1], index: 7, kind: input, shape index: {}]   ;;  %s3261_s8 = inlined_call_operand.vmem [shape: f32[32,16], index: 8, kind: input, shape index: {}]   ;;  %s3262_s9 = inlined_call_operand.hbm [shape: f32[1,32,64], index: 9, kind: output, shape index: {}]  }
   0x1   :  { %v1945_v0 = vld [vmem:[%s3254_s1 + $0x30] sm:$0xff]  ;;  %v1946_v1 = vld [vmem:[%s3254_s1 + $0x38] sm:$0xff]  ;;  %2090 = vset.pattern.permute.xlu1 %v2245_v4  ;;  %2089 = vset.pattern.permute.xlu0 %v2246_v5 }
   0x2   :  { %v2311_v2 = vmul.f32 %v1945_v0, %v1945_v0  ;;  %v793_v3 = vmul.f32 %v1946_v1, %v1946_v1 }
   0x3   :  { %14 = vsyncpa [#allocation4], 0  ;;  %s2247_s13 = smov 127   ;;  %v1944_v6 = vld [vmem:[%s3254_s1 + $0x28] sm:$0xff]  ;;  %s2248_s16 = smov 126   ;;  %v1943_v8 = vld [vmem:[%s3254_s1 + $0x20] sm:$0xff]  ;;  %v33_v58 = vlaneseq }
   0x4   :  { %802 = vrot.lane.b32.xlu1 %v2311_v2, %s2247_s13  ;;  %804 = vrot.lane.b32.xlu0 %v793_v3, %s2247_s13  ;;  %v791_v7 = vmul.f32 %v1944_v6, %v1944_v6  ;;  %v790_v9 = vmul.f32 %v1943_v8, %v1943_v8  ;;  %v2334_v10 = vld [vmem:[%s3254_s1 + $0x18] sm:$0xff]  ;;  %v2249_v12 = vmov 2   ;;  %v38_v13 = vld [vmem:[%s3254_s1 + $0x10] sm:$0xff]  ;;  %vm212_vm0 = vcmask 130048   ;;  %s2251_s14 = smov 32  }
   0x5   :  { %v2338_v11 = vmul.f32 %v2334_v10, %v2334_v10  ;;  %v2350_v14 = vmul.f32 %v38_v13, %v38_v13  ;;  %v37_v15 = vld [vmem:[%s3254_s1 + $0x8] sm:$0xff]  ;;  %v36_v17 = vld [vmem:[%s3254_s1] sm:$0xff]  ;;  %v2400_v59 = vshrl.u32 %v33_v58, 7 }
   0x6   :  { %v2362_v16 = vmul.f32 %v37_v15, %v37_v15  ;;  %v2373_v18 = vmul.f32 %v36_v17, %v36_v17  ;;  %v1942_v61 = vld [vmem:[%s3253_s0 + $0x4] sm:$0x7] }
   0x7   :  { %v782_v62 = vmul.f32 %v1942_v61, %v1942_v61  ;;  %v134_v63 = vsub.s32 1, %v2400_v59 }
   0x8   :  { %818 = vrot.lane.b32.xlu1 %v2311_v2, %s2248_s16  ;;  %820 = vrot.lane.b32.xlu0 %v793_v3, %s2248_s16 }
   0xc   :  { %816 = vrot.lane.b32.xlu1 %v791_v7, %s2248_s16  ;;  %800 = vrot.lane.b32.xlu0 %v791_v7, %s2247_s13 }
  0x10   :  { %814 = vrot.lane.b32.xlu1 %v790_v9, %s2248_s16  ;;  %798 = vrot.lane.b32.xlu0 %v790_v9, %s2247_s13 }
  0x14   :  { %871 = vperm.xlu1 %2090, %v1946_v1   ;;  %847 = vperm.xlu0 %2089, %v1946_v1  }
  0x18   :  { %62 = vrot.lane.b32.xlu1 %v2338_v11, %s2247_s13  ;;  %2091 = vset.pattern.permute.xlu0 %v2249_v12 }
  0x19   :  { %2092 = vset.pattern.permute.xlu1 %v2246_v5  ;;  %899 = vperm.xlu0 %2091, %v1946_v1   ;;  %v162_v1 = vsub.s32 2, %v2400_v59 }
  0x1c   :  { %78 = vrot.lane.b32.xlu1 %v2338_v11, %s2248_s16 }
  0x1d   :  { %2093 = vset.pattern.permute.xlu0 %v2245_v4 }
  0x1e   :  { %867 = vperm.xlu0 %2093, %v1945_v0  }
  0x20   :  { %842 = vperm.xlu1 %2092, %v1945_v0  }
  0x22   :  { %863 = vperm.xlu0 %2093, %v1944_v6  }
  0x24   :  { %60 = vrot.lane.b32.xlu1 %v2350_v14, %s2247_s13 }
  0x25   :  { %2094 = vset.pattern.permute.xlu1 %v2249_v12 }
  0x26   :  { %859 = vperm.xlu0 %2093, %v1943_v8  }
  0x28   :  { %895 = vperm.xlu1 %2094, %v1945_v0   ;;  %v2407_v0 = vsub.s32 0, %v2400_v59 }
  0x2a   :  { %2099 = vset.pattern.permute.xlu0 %v2246_v5 }
  0x2c   :  { %76 = vrot.lane.b32.xlu1 %v2350_v14, %s2248_s16 }
  0x2d   :  { %2095 = vset.pattern.permute.xlu1 %v2246_v5 }
  0x30   :  { %837 = vperm.xlu1 %2095, %v1944_v6  }
  0x34   :  { %58 = vrot.lane.b32.xlu1 %v2362_v16, %s2247_s13 }
  0x35   :  { %2096 = vset.pattern.permute.xlu1 %v2249_v12 }
  0x38   :  { %891 = vperm.xlu1 %2096, %v1944_v6   ;;  %v905_v6 = vrot.slane %v1942_v61, %v162_v1 }
  0x3c   :  { %74 = vrot.lane.b32.xlu1 %v2362_v16, %s2248_s16 }
  0x3d   :  { %2097 = vset.pattern.permute.xlu1 %v2246_v5 }
  0x40   :  { %832 = vperm.xlu1 %2097, %v1943_v8  }
  0x44   :  { %56 = vrot.lane.b32.xlu1 %v2373_v18, %s2247_s13 }
  0x45   :  { %2098 = vset.pattern.permute.xlu1 %v2249_v12 }
  0x48   :  { %887 = vperm.xlu1 %2098, %v1943_v8  }
  0x4c   :  { %72 = vrot.lane.b32.xlu1 %v2373_v18, %s2248_s16 }
  0x4d   :  { %2100 = vset.pattern.permute.xlu1 %v2246_v5 }
  0x76   :  { %v805_v19 = vpop.permute.xlu0 %804  ;;  %v803_v20 = vpop.permute.xlu1 %802 }
  0x77   :  { %v813_v21 = vadd.f32 %v805_v19, %v793_v3  ;;  %v812_v24 = vadd.f32 %v803_v20, %v2311_v2  ;;  %v877_v2 = vrot.slane %v1942_v61, %v134_v63  ;;  %v853_v3 = vrot.slane %v1942_v61, %v2407_v0 }
  0x7a   :  { %v821_v22 = vpop.permute.xlu0 %820  ;;  %v819_v23 = vpop.permute.xlu1 %818 }
  0x7b   :  { %v829_v25 = vadd.f32 %v821_v22, %v813_v21  ;;  %v828_v28 = vadd.f32 %v819_v23, %v812_v24 }
  0x7d   :  { %931 = vperm.xlu0 %2099, %v829_v25  }
  0x7e   :  { %v801_v26 = vpop.permute.xlu0 %800  ;;  %v817_v27 = vpop.permute.xlu1 %816 }
  0x7f   :  { %v811_v29 = vadd.f32 %v801_v26, %v791_v7 }
  0x81   :  { %v827_v30 = vadd.f32 %v817_v27, %v811_v29  ;;  %926 = vperm.xlu0 %2099, %v828_v28  }
  0x82   :  { %v799_v31 = vpop.permute.xlu0 %798  ;;  %v815_v32 = vpop.permute.xlu1 %814 }
  0x83   :  { %v810_v33 = vadd.f32 %v799_v31, %v790_v9 }
  0x85   :  { %v826_v34 = vadd.f32 %v815_v32, %v810_v33  ;;  %921 = vperm.xlu0 %2099, %v827_v30  }
  0x87   :  { %916 = vperm.xlu1 %2100, %v826_v34  }
  0x89   :  { %2102 = vset.pattern.permute.xlu0 %v2249_v12 }
  0x8a   :  { %157 = vperm.xlu0 %2102, %v2334_v10  }
  0x8b   :  { %2101 = vset.pattern.permute.xlu1 %v2245_v4 }
  0x8c   :  { %129 = vperm.xlu1 %2101, %v2334_v10  }
  0x8e   :  { %153 = vperm.xlu0 %2102, %v38_v13  }
  0x8f   :  { %v872_v35 = vpop.permute.xlu1 %871  ;;  %v848_v60 = vpop.permute.xlu0 %847 }
  0x90   :  { %2103 = vset.pattern.permute.xlu1 %v2246_v5  ;;  %v881_v7 = vmul.f32 %v877_v2, %v872_v35  ;;  %v857_v8 = vmul.f32 %v853_v3, %v848_v60 }
  0x91   :  { %100 = vperm.xlu1 %2103, %v38_v13  }
  0x92   :  { %2107 = vset.pattern.permute.xlu0 %v2245_v4 }
  0x93   :  { %v63_v36 = vpop.permute.xlu1 %62  ;;  %117 = vperm.xlu0 %2107, %v36_v17  }
  0x94   :  { %v71_v43 = vadd.f32 %v63_v36, %v2338_v11  ;;  %v787_v11 = vrot.slane %v782_v62, 2 }
  0x95   :  { %2104 = vset.pattern.permute.xlu1 %v2245_v4  ;;  %v900_v4 = vpop.permute.xlu0 %899 }
  0x96   :  { %125 = vperm.xlu1 %2104, %v38_v13   ;;  %v909_v13 = vmul.f32 %v905_v6, %v900_v4 }
  0x97   :  { %v79_v37 = vpop.permute.xlu1 %78  ;;  %2108 = vset.pattern.permute.xlu0 %v2246_v5 }
  0x98   :  { %105 = vperm.xlu0 %2108, %v2334_v10   ;;  %v87_v46 = vadd.f32 %v79_v37, %v71_v43 }
  0x99   :  { %v868_v9 = vpop.permute.xlu0 %867 }
  0x9a   :  { %121 = vperm.xlu1 %2104, %v37_v15  }
  0x9b   :  { %v843_v38 = vpop.permute.xlu1 %842 }
  0x9c   :  { %95 = vperm.xlu0 %2108, %v37_v15  }
  0x9e   :  { %2105 = vset.pattern.permute.xlu1 %v2249_v12 }
  0x9f   :  { %v61_v39 = vpop.permute.xlu1 %60  ;;  %149 = vperm.xlu1 %2105, %v37_v15  }
  0xa0   :  { %v70_v41 = vadd.f32 %v61_v39, %v2350_v14  ;;  %v864_v14 = vpop.permute.xlu0 %863 }
  0xa1   :  { %v879_v24 = vmul.f32 %v877_v2, %v864_v14 }
  0xa3   :  { %v896_v40 = vpop.permute.xlu1 %895  ;;  %2106 = vset.pattern.permute.xlu1 %v2246_v5 }
  0xa4   :  { %90 = vperm.xlu1 %2106, %v36_v17   ;;  %v860_v19 = vpop.permute.xlu0 %859  ;;  %v908_v21 = vmul.f32 %v905_v6, %v896_v40 }
  0xa5   :  { %v878_v26 = vmul.f32 %v877_v2, %v860_v19 }
  0xa7   :  { %v77_v42 = vpop.permute.xlu1 %76 }
  0xa8   :  { %v86_v44 = vadd.f32 %v77_v42, %v70_v41  ;;  %2109 = vset.pattern.permute.xlu1 %v2249_v12  ;;  %v885_v12 = vadd.f32 %v881_v7, %v857_v8 }
  0xa9   :  { %145 = vperm.xlu1 %2109, %v36_v17   ;;  %v880_v17 = vmul.f32 %v877_v2, %v868_v9 }
  0xaa   :  { %184 = vperm.xlu0 %2108, %v86_v44  }
  0xab   :  { %v838_v45 = vpop.permute.xlu1 %837 }
  0xac   :  { %v855_v22 = vmul.f32 %v853_v3, %v838_v45 }
  0xad   :  { %2110 = vset.pattern.permute.xlu1 %v2246_v5  ;;  %v784_v5 = vrot.slane %v782_v62, 1 }
  0xae   :  { %189 = vperm.xlu1 %2110, %v87_v46   ;;  %v883_v31 = vadd.f32 %v879_v24, %v855_v22 }
  0xaf   :  { %v59_v47 = vpop.permute.xlu1 %58  ;;  %v786_v10 = vadd.f32 %v784_v5, %v782_v62 }
  0xb0   :  { %v69_v49 = vadd.f32 %v59_v47, %v2362_v16  ;;  %v856_v16 = vmul.f32 %v853_v3, %v843_v38 }
  0xb1   :  { %v789_v15 = vadd.f32 %v787_v11, %v786_v10 }
  0xb2   :  { %v884_v23 = vadd.f32 %v880_v17, %v856_v16 }
  0xb3   :  { %v892_v48 = vpop.permute.xlu1 %891  ;;  %v937_v20 = vrot.slane %v789_v15, %v2407_v0 }
  0xb4   :  { %v907_v29 = vmul.f32 %v905_v6, %v892_v48  ;;  %v912_v30 = vadd.f32 %v908_v21, %v884_v23 }
  0xb6   :  { %v944_v39 = vmul.f32 2.0, %v912_v30  ;;  %v911_v40 = vadd.f32 %v907_v29, %v883_v31 }
  0xb7   :  { %v75_v50 = vpop.permute.xlu1 %74 }
  0xb8   :  { %v85_v51 = vadd.f32 %v75_v50, %v69_v49  ;;  %v943_v47 = vmul.f32 2.0, %v911_v40 }
  0xba   :  { %179 = vperm.xlu1 %2110, %v85_v51  }
  0xbb   :  { %v833_v52 = vpop.permute.xlu1 %832 }
  0xbc   :  { %v854_v25 = vmul.f32 %v853_v3, %v833_v52  ;;  %v35_v3 = vld [vmem:[%s3253_s0] sm:$0x7] }
  0xbd   :  { %v40_v5 = vmul.f32 %v35_v3, %v35_v3  ;;  %v135_v7 = vrot.slane %v35_v3, %v134_v63  ;;  %v111_v8 = vrot.slane %v35_v3, %v2407_v0  ;;  %v163_v11 = vrot.slane %v35_v3, %v162_v1 }
  0xbe   :  { %v882_v34 = vadd.f32 %v878_v26, %v854_v25 }
  0xbf   :  { %v57_v53 = vpop.permute.xlu1 %56  ;;  %v42_v10 = vrot.slane %v40_v5, 1  ;;  %v45_v17 = vrot.slane %v40_v5, 2 }
  0xc0   :  { %v68_v55 = vadd.f32 %v57_v53, %v2373_v18  ;;  %v913_v18 = vadd.f32 %v909_v13, %v885_v12 }
  0xc1   :  { %v44_v16 = vadd.f32 %v42_v10, %v40_v5 }
  0xc2   :  { %v945_v27 = vmul.f32 2.0, %v913_v18 }
  0xc3   :  { %v888_v54 = vpop.permute.xlu1 %887  ;;  %v47_v22 = vadd.f32 %v45_v17, %v44_v16 }
  0xc4   :  { %v906_v33 = vmul.f32 %v905_v6, %v888_v54 }
  0xc6   :  { %v910_v41 = vadd.f32 %v906_v33, %v882_v34 }
  0xc7   :  { %v73_v56 = vpop.permute.xlu1 %72 }
  0xc8   :  { %v84_v57 = vadd.f32 %v73_v56, %v68_v55  ;;  %v942_v51 = vmul.f32 2.0, %v910_v41 }
  0xca   :  { %174 = vperm.xlu0 %2108, %v84_v57  }
  0xf8   :  { %v932_v28 = vpop.permute.xlu0 %931 }
  0xf9   :  { %v941_v32 = vadd.f32 %v937_v20, %v932_v28 }
  0xfb   :  { %v949_v35 = vsub.f32 %v941_v32, %v945_v27  ;;  %v195_v27 = vrot.slane %v47_v22, %v2407_v0 }
  0xfc   :  { %v927_v36 = vpop.permute.xlu0 %926 }
  0xfd   :  { %v2416_v37 = vmax.f32 %v949_v35, 0.0  ;;  %v940_v38 = vadd.f32 %v937_v20, %v927_v36 }
  0xff   :  { %v948_v42 = vsub.f32 %v940_v38, %v944_v39  ;;  %v963_v43 = vsel %vm212_vm0, %v2416_v37, inf }
 0x100   :  { %v922_v44 = vpop.permute.xlu0 %921  ;;  %964 = vmin.xlane.f32.xlu1 %v963_v43 }
 0x101   :  { %v2420_v45 = vmax.f32 %v948_v42, 0.0  ;;  %v939_v46 = vadd.f32 %v937_v20, %v922_v44 }
 0x102   :  { %v917_v48 = vpop.permute.xlu1 %916 }
 0x103   :  { %v947_v49 = vsub.f32 %v939_v46, %v943_v47  ;;  %v938_v50 = vadd.f32 %v937_v20, %v917_v48  ;;  %v960_v52 = vsel %vm212_vm0, %v2420_v45, inf }
 0x104   :  { %961 = vmin.xlane.f32.xlu0 %v960_v52 }
 0x105   :  { %v2424_v53 = vmax.f32 %v947_v49, 0.0  ;;  %v946_v54 = vsub.f32 %v938_v50, %v942_v51  ;;  %v158_v60 = vpop.permute.xlu0 %157 }
 0x106   :  { %v167_v24 = vmul.f32 %v163_v11, %v158_v60 }
 0x107   :  { %v2426_v55 = vmax.f32 %v946_v54, 0.0  ;;  %v957_v56 = vsel %vm212_vm0, %v2424_v53, inf  ;;  %v130_v57 = vpop.permute.xlu1 %129 }
 0x108   :  { %958 = vmin.xlane.f32.xlu1 %v957_v56  ;;  %v139_v18 = vmul.f32 %v135_v7, %v130_v57 }
 0x109   :  { %v954_v61 = vsel %vm212_vm0, %v2426_v55, inf  ;;  %v154_v2 = vpop.permute.xlu0 %153 }
 0x10a   :  { %955 = vmin.xlane.f32.xlu0 %v954_v61  ;;  %v166_v19 = vmul.f32 %v163_v11, %v154_v2 }
 0x10c   :  { %v101_v62 = vpop.permute.xlu1 %100 }
 0x10d   :  { %v114_v12 = vmul.f32 %v111_v8, %v101_v62 }
 0x10e   :  { %v118_v6 = vpop.permute.xlu0 %117 }
 0x10f   :  { %v136_v49 = vmul.f32 %v135_v7, %v118_v6  ;;  %v2458_v6 = vand.u32 127, %v33_v58 }
 0x111   :  { %v126_v4 = vpop.permute.xlu1 %125 }
 0x112   :  { %v138_v13 = vmul.f32 %v135_v7, %v126_v4 }
 0x113   :  { %v106_v14 = vpop.permute.xlu0 %105 }
 0x114   :  { %v142_v20 = vadd.f32 %v138_v13, %v114_v12  ;;  %v115_v21 = vmul.f32 %v111_v8, %v106_v14 }
 0x115   :  { %v122_v9 = vpop.permute.xlu1 %121 }
 0x116   :  { %v143_v25 = vadd.f32 %v139_v18, %v115_v21  ;;  %v170_v26 = vadd.f32 %v166_v19, %v142_v20  ;;  %v137_v31 = vmul.f32 %v135_v7, %v122_v9 }
 0x117   :  { %v96_v23 = vpop.permute.xlu0 %95 }
 0x118   :  { %v171_v59 = vadd.f32 %v167_v24, %v143_v25  ;;  %v202_v1 = vmul.f32 2.0, %v170_v26  ;;  %v113_v32 = vmul.f32 %v111_v8, %v96_v23 }
 0x11a   :  { %v150_v15 = vpop.permute.xlu1 %149  ;;  %v203_v34 = vmul.f32 2.0, %v171_v59  ;;  %v141_v40 = vadd.f32 %v137_v31, %v113_v32 }
 0x11b   :  { %v165_v39 = vmul.f32 %v163_v11, %v150_v15 }
 0x11d   :  { %v169_v43 = vadd.f32 %v165_v39, %v141_v40 }
 0x11f   :  { %v91_v63 = vpop.permute.xlu1 %90  ;;  %v201_v46 = vmul.f32 2.0, %v169_v43 }
 0x120   :  { %v112_v50 = vmul.f32 %v111_v8, %v91_v63 }
 0x122   :  { %v140_v54 = vadd.f32 %v136_v49, %v112_v50 }
 0x124   :  { %v146_v28 = vpop.permute.xlu1 %145 }
 0x125   :  { %v185_v29 = vpop.permute.xlu0 %184  ;;  %v164_v56 = vmul.f32 %v163_v11, %v146_v28 }
 0x126   :  { %v198_v30 = vadd.f32 %v195_v27, %v185_v29 }
 0x127   :  { %v168_v60 = vadd.f32 %v164_v56, %v140_v54 }
 0x128   :  { %v206_v33 = vsub.f32 %v198_v30, %v202_v1 }
 0x129   :  { %v190_v35 = vpop.permute.xlu1 %189  ;;  %v200_v61 = vmul.f32 2.0, %v168_v60 }
 0x12a   :  { %v2441_v36 = vmax.f32 %v206_v33, 0.0  ;;  %v199_v38 = vadd.f32 %v195_v27, %v190_v35 }
 0x12c   :  { %v207_v41 = vsub.f32 %v199_v38, %v203_v34  ;;  %v219_v42 = vsel %vm212_vm0, %v2441_v36, inf }
 0x12d   :  { %220 = vmin.xlane.f32.xlu0 %v219_v42 }
 0x12e   :  { %v2445_v0 = vmax.f32 %v207_v41, 0.0 }
 0x130   :  { %v222_v44 = vsel %vm212_vm0, %v2445_v0, inf }
 0x131   :  { %223 = vmin.xlane.f32.xlu1 %v222_v44 }
 0x135   :  { %v180_v47 = vpop.permute.xlu1 %179 }
 0x136   :  { %v197_v48 = vadd.f32 %v195_v27, %v180_v47 }
 0x138   :  { %v205_v51 = vsub.f32 %v197_v48, %v201_v46 }
 0x13a   :  { %v2449_v52 = vmax.f32 %v205_v51, 0.0 }
 0x13c   :  { %v216_v57 = vsel %vm212_vm0, %v2449_v52, inf }
 0x13d   :  { %217 = vmin.xlane.f32.xlu1 %v216_v57 }
 0x145   :  { %v175_v62 = vpop.permute.xlu0 %174 }
 0x146   :  { %v196_v2 = vadd.f32 %v195_v27, %v175_v62 }
 0x148   :  { %v204_v3 = vsub.f32 %v196_v2, %v200_v61 }
 0x14a   :  { %v2453_v4 = vmax.f32 %v204_v3, 0.0 }
 0x14c   :  { %v213_v5 = vsel %vm212_vm0, %v2453_v4, inf }
 0x14d   :  { %214 = vmin.xlane.f32.xlu0 %v213_v5 }
 0x189   :  { %v2460_v7 = vpop.xlane.xlu1 %964 }
 0x18a   :  { %vm969_vm1 = vcmp.eq.f32.partialorder %v2416_v37, %v2460_v7  ;;  %2111 = vrsqrt.f32 %v2460_v7 }
 0x18b   :  { %v973_v8 = vsel %vm969_vm1, %v2458_v6, 16 }
 0x18c   :  { %v1019_v10 = vsel %vm212_vm0, %v973_v8, 2147483647 }
 0x18d   :  { %v2465_v9 = vpop.xlane.xlu0 %961  ;;  %v1021_v11 = vshra.s32 %v1019_v10, 16  ;;  %v1020_v46 = vand.u32 65535, %v1019_v10 }
 0x18e   :  { %vm968_vm2 = vcmp.eq.f32.partialorder %v2420_v45, %v2465_v9  ;;  %2113 = vrsqrt.f32 %v2465_v9 }
 0x18f   :  { %v972_v12 = vsel %vm968_vm2, %v2458_v6, 16  ;;  %v1023_v58 = vcvt.s32.f32 %v1021_v11  ;;  %v1022_v48 = vcvt.s32.f32 %v1020_v46  ;;  %vm1069_vm2 = vcmp.eq.f32.partialorder %v2460_v7, inf }
 0x190   :  { %v1004_v14 = vsel %vm212_vm0, %v972_v12, 2147483647 }
 0x191   :  { %v2471_v13 = vpop.xlane.xlu1 %958  ;;  %1024 = vmin.xlane.f32.xlu1 %v1023_v58  ;;  %v1006_v16 = vshra.s32 %v1004_v14, 16  ;;  %v1005_v49 = vand.u32 65535, %v1004_v14 }
 0x192   :  { %vm967_vm3 = vcmp.eq.f32.partialorder %v2424_v53, %v2471_v13  ;;  %2115 = vrsqrt.f32 %v2471_v13 }
 0x193   :  { %v2474_v15 = vpop.xlane.xlu0 %955  ;;  %v1008_v17 = vcvt.s32.f32 %v1006_v16  ;;  %v971_v18 = vsel %vm967_vm3, %v2458_v6, 16  ;;  %v1007_v54 = vcvt.s32.f32 %v1005_v49  ;;  %vm1071_vm3 = vcmp.eq.f32.partialorder %v2460_v7, 0.0 }
 0x194   :  { %vm966_vm4 = vcmp.eq.f32.partialorder %v2426_v55, %v2474_v15  ;;  %v989_v19 = vsel %vm212_vm0, %v971_v18, 2147483647  ;;  %2117 = vrsqrt.f32 %v2474_v15 }
 0x195   :  { %v970_v20 = vsel %vm966_vm4, %v2458_v6, 16  ;;  %1009 = vmin.xlane.f32.xlu0 %v1008_v17  ;;  %v991_v21 = vshra.s32 %v989_v19, 16  ;;  %v990_v56 = vand.u32 65535, %v989_v19  ;;  %vm1062_vm4 = vcmp.eq.f32.partialorder %v2465_v9, inf }
 0x196   :  { %v974_v22 = vsel %vm212_vm0, %v970_v20, 2147483647 }
 0x197   :  { %v976_v23 = vshra.s32 %v974_v22, 16  ;;  %v993_v63 = vcvt.s32.f32 %v991_v21  ;;  %v975_v57 = vand.u32 65535, %v974_v22  ;;  %v992_v62 = vcvt.s32.f32 %v990_v56 }
 0x199   :  { %v978_v24 = vcvt.s32.f32 %v976_v23  ;;  %994 = vmin.xlane.f32.xlu1 %v993_v63  ;;  %v977_v3 = vcvt.s32.f32 %v975_v57 }
 0x19b   :  { %979 = vmin.xlane.f32.xlu0 %v978_v24 }
 0x1b6   :  { %v2484_v25 = vpop.xlane.xlu0 %220 }
 0x1b7   :  { %vm227_vm5 = vcmp.eq.f32.partialorder %v2441_v36, %v2484_v25 }
 0x1b8   :  { %v231_v26 = vsel %vm227_vm5, %v2458_v6, 16  ;;  %vm1064_vm5 = vcmp.eq.f32.partialorder %v2465_v9, 0.0 }
 0x1b9   :  { %v263_v59 = vsel %vm212_vm0, %v231_v26, 2147483647 }
 0x1ba   :  { %v2489_v27 = vpop.xlane.xlu1 %223  ;;  %v265_v1 = vshra.s32 %v263_v59, 16  ;;  %v264_v10 = vand.u32 65535, %v263_v59  ;;  %v2112_v59 = vpop.eup %2111 }
 0x1bb   :  { %vm228_vm6 = vcmp.eq.f32.partialorder %v2445_v0, %v2489_v27 }
 0x1bc   :  { %v232_v28 = vsel %vm228_vm6, %v2458_v6, 16  ;;  %v267_v29 = vcvt.s32.f32 %v265_v1  ;;  %v1068_v1 = vmul.f32 %v2112_v59, %v2460_v7  ;;  %vm1055_vm6 = vcmp.eq.f32.partialorder %v2471_v13, inf }
 0x1bd   :  { %v278_v30 = vsel %vm212_vm0, %v232_v28, 2147483647  ;;  %v2114_v28 = vpop.eup %2113 }
 0x1be   :  { %v280_v31 = vshra.s32 %v278_v30, 16  ;;  %268 = vmin.xlane.f32.xlu0 %v267_v29  ;;  %v279_v11 = vand.u32 65535, %v278_v30  ;;  %v1061_v30 = vmul.f32 %v2114_v28, %v2465_v9 }
 0x1c0   :  { %v282_v32 = vcvt.s32.f32 %v280_v31  ;;  %v2116_v31 = vpop.eup %2115 }
 0x1c2   :  { %283 = vmin.xlane.f32.xlu1 %v282_v32 }
 0x1c6   :  { %v2496_v33 = vpop.xlane.xlu1 %217 }
 0x1c7   :  { %vm226_vm7 = vcmp.eq.f32.partialorder %v2449_v52, %v2496_v33 }
 0x1c8   :  { %v230_v34 = vsel %vm226_vm7, %v2458_v6, 16  ;;  %vm1048_vm7 = vcmp.eq.f32.partialorder %v2474_v15, inf }
 0x1c9   :  { %v248_v35 = vsel %vm212_vm0, %v230_v34, 2147483647  ;;  %v2118_v34 = vpop.eup %2117 }
 0x1ca   :  { %v250_v38 = vshra.s32 %v248_v35, 16  ;;  %v249_v19 = vand.u32 65535, %v248_v35 }
 0x1cc   :  { %v252_v39 = vcvt.s32.f32 %v250_v38  ;;  %v251_v21 = vcvt.s32.f32 %v249_v19  ;;  %v1063_v38 = vsel %vm1062_vm4, %v2465_v9, %v1061_v30  ;;  %vm323_vm4 = vcmp.eq.f32.partialorder %v2484_v25, 0.0 }
 0x1ce   :  { %253 = vmin.xlane.f32.xlu1 %v252_v39 }
 0x1d6   :  { %v2502_v40 = vpop.xlane.xlu0 %214 }
 0x1d7   :  { %vm225_vm8 = vcmp.eq.f32.partialorder %v2453_v4, %v2502_v40 }
 0x1d8   :  { %v229_v41 = vsel %vm225_vm8, %v2458_v6, 16  ;;  %vm1057_vm8 = vcmp.eq.f32.partialorder %v2471_v13, 0.0 }
 0x1d9   :  { %v233_v42 = vsel %vm212_vm0, %v229_v41, 2147483647  ;;  %v1065_v41 = vand.u32 2147483648, %v2465_v9 }
 0x1da   :  { %v235_v43 = vshra.s32 %v233_v42, 16  ;;  %v234_v23 = vand.u32 65535, %v233_v42  ;;  %v1047_v42 = vmul.f32 %v2118_v34, %v2474_v15 }
 0x1dc   :  { %v237_v44 = vcvt.s32.f32 %v235_v43 }
 0x1de   :  { %238 = vmin.xlane.f32.xlu0 %v237_v44 }
 0x21a   :  { %v2508_v47 = vpop.xlane.xlu1 %1024 }
 0x21b   :  { %vm1026_vm9 = vcmp.eq.f32.partialorder %v1023_v58, %v2508_v47  ;;  %v266_v58 = vcvt.s32.f32 %v264_v10  ;;  %v1031_v57 = vcvt.f32.s32 %v2508_v47 }
 0x21c   :  { %v1027_v50 = vsel %vm1026_vm9, %v1022_v48, inf  ;;  %v1049_v48 = vsel %vm1048_vm7, %v2474_v15, %v1047_v42  ;;  %vm1050_vm9 = vcmp.eq.f32.partialorder %v2474_v15, 0.0 }
 0x21d   :  { %1028 = vmin.xlane.f32.xlu1 %v1027_v50  ;;  %v1051_v50 = vand.u32 2147483648, %v2474_v15 }
 0x21e   :  { %v2511_v51 = vpop.xlane.xlu0 %1009 }
 0x21f   :  { %vm1011_vm10 = vcmp.eq.f32.partialorder %v1008_v17, %v2511_v51  ;;  %v281_v17 = vcvt.s32.f32 %v279_v11  ;;  %v1052_v9 = vsel %vm1050_vm9, %v1051_v50, %v1049_v48 }
 0x220   :  { %v1012_v60 = vsel %vm1011_vm10, %v1007_v54, inf }
 0x221   :  { %1013 = vmin.xlane.f32.xlu0 %v1012_v60  ;;  %v1074_v60 = vadd.f32 1e-08, %v1052_v9 }
 0x222   :  { %v2514_v61 = vpop.xlane.xlu1 %994 }
 0x223   :  { %vm996_vm11 = vcmp.eq.f32.partialorder %v993_v63, %v2514_v61 }
 0x224   :  { %v2516_v2 = vpop.xlane.xlu0 %979  ;;  %v997_v5 = vsel %vm996_vm11, %v992_v62, inf }
 0x225   :  { %vm981_vm12 = vcmp.eq.f32.partialorder %v978_v24, %v2516_v2  ;;  %998 = vmin.xlane.f32.xlu1 %v997_v5  ;;  %v236_v24 = vcvt.s32.f32 %v234_v23  ;;  %v1016_v5 = vcvt.f32.s32 %v2511_v51  ;;  %v986_v47 = vcvt.f32.s32 %v2516_v2 }
 0x226   :  { %v982_v8 = vsel %vm981_vm12, %v977_v3, inf  ;;  %v1032_v3 = vshll.u32 %v1031_v57, 16 }
 0x227   :  { %983 = vmin.xlane.f32.xlu0 %v982_v8  ;;  %v1017_v11 = vshll.u32 %v1016_v5, 16  ;;  %v987_v59 = vshll.u32 %v986_v47, 16 }
 0x247   :  { %v2520_v12 = vpop.xlane.xlu0 %268 }
 0x248   :  { %vm270_vm13 = vcmp.eq.f32.partialorder %v267_v29, %v2520_v12  ;;  %v1070_v29 = vsel %vm1069_vm2, %v2460_v7, %v1068_v1 }
 0x249   :  { %v271_v14 = vsel %vm270_vm13, %v266_v58, inf  ;;  %v1001_v58 = vcvt.f32.s32 %v2514_v61 }
 0x24a   :  { %272 = vmin.xlane.f32.xlu0 %v271_v14 }
 0x24b   :  { %v2523_v16 = vpop.xlane.xlu1 %283 }
 0x24c   :  { %vm285_vm14 = vcmp.eq.f32.partialorder %v282_v32, %v2523_v16  ;;  %v1072_v32 = vand.u32 2147483648, %v2460_v7  ;;  %v1058_v7 = vand.u32 2147483648, %v2471_v13  ;;  %v290_v5 = vcvt.f32.s32 %v2523_v16 }
 0x24d   :  { %v286_v18 = vsel %vm285_vm14, %v281_v17, inf  ;;  %v2250_v17 = vmov 0.0  }
 0x24e   :  { %287 = vmin.xlane.f32.xlu1 %v286_v18  ;;  %v1073_v35 = vsel %vm1071_vm3, %v1072_v32, %v1070_v29  ;;  %vm321_vm3 = vcmp.eq.f32.partialorder %v2484_v25, inf }
 0x24f   :  { %v1077_v43 = vadd.f32 1e-08, %v1073_v35 }
 0x251   :  { %2119 = vrcp.f32 %v1077_v43 }
 0x257   :  { %v2526_v20 = vpop.xlane.xlu1 %253 }
 0x258   :  { %vm255_vm15 = vcmp.eq.f32.partialorder %v252_v39, %v2526_v20  ;;  %v1054_v39 = vmul.f32 %v2116_v31, %v2471_v13 }
 0x259   :  { %v256_v22 = vsel %vm255_vm15, %v251_v21, inf }
 0x25a   :  { %257 = vmin.xlane.f32.xlu1 %v256_v22  ;;  %v1056_v46 = vsel %vm1055_vm6, %v2471_v13, %v1054_v39  ;;  %v1002_v22 = vshll.u32 %v1001_v58, 16  ;;  %vm330_vm6 = vcmp.eq.f32.partialorder %v2489_v27, 0.0  ;;  %v291_v58 = vshll.u32 %v290_v5, 16 }
 0x25b   :  { %v1059_v54 = vsel %vm1057_vm8, %v1058_v7, %v1056_v46 }
 0x25c   :  { %v1075_v56 = vadd.f32 1e-08, %v1059_v54  ;;  %v324_v54 = vand.u32 2147483648, %v2484_v25 }
 0x25e   :  { %v2560_v14 = vpop.eup %2119 }
 0x267   :  { %v2529_v63 = vpop.xlane.xlu0 %238 }
 0x268   :  { %vm240_vm1 = vcmp.eq.f32.partialorder %v237_v44, %v2529_v63  ;;  %v1066_v44 = vsel %vm1064_vm5, %v1065_v41, %v1063_v38  ;;  %vm328_vm5 = vcmp.eq.f32.partialorder %v2489_v27, inf }
 0x269   :  { %v241_v26 = vsel %vm240_vm1, %v236_v24, inf  ;;  %v1076_v49 = vadd.f32 1e-08, %v1066_v44 }
 0x26a   :  { %242 = vmin.xlane.f32.xlu0 %v241_v26 }
 0x26b   :  { %2121 = vrcp.f32 %v1076_v49 }
 0x26c   :  { %2123 = vrcp.f32 %v1075_v56  ;;  %v331_v56 = vand.u32 2147483648, %v2489_v27 }
 0x26d   :  { %2125 = vrcp.f32 %v1074_v60 }
 0x26e   :  { %2127 = vrsqrt.f32 %v2484_v25 }
 0x26f   :  { %2129 = vrsqrt.f32 %v2489_v27 }
 0x278   :  { %v2574_v26 = vpop.eup %2121 }
 0x279   :  { %v2587_v34 = vpop.eup %2123 }
 0x27a   :  { %v2591_v38 = vpop.eup %2125 }
 0x27b   :  { %v2128_v7 = vpop.eup %2127 }
 0x27c   :  { %v2130_v48 = vpop.eup %2129 }
 0x27d   :  { %v327_v49 = vmul.f32 %v2130_v48, %v2489_v27 }
 0x27f   :  { %v329_v9 = vsel %vm328_vm5, %v2489_v27, %v327_v49 }
 0x280   :  { %v332_v60 = vsel %vm330_vm6, %v331_v56, %v329_v9 }
 0x2a6   :  { %v1029_v62 = vpop.xlane.xlu1 %1028 }
 0x2a7   :  { %v1030_v8 = vcvt.f32.s32 %v1029_v62  ;;  %v336_v62 = vadd.f32 1e-08, %v332_v60 }
 0x2a9   :  { %v1033_v10 = vadd.s32 %v1032_v3, %v1030_v8  ;;  %v275_v3 = vcvt.f32.s32 %v2520_v12 }
 0x2aa   :  { %v1014_v13 = vpop.xlane.xlu0 %1013 }
 0x2ab   :  { %vm1037_vm10 = vcmp.eq.s32.totalorder %v2458_v6, %v1033_v10  ;;  %v1015_v15 = vcvt.f32.s32 %v1014_v13 }
 0x2ac   :  { %v1950_v18 = vsel %vm1037_vm10, 1.0, %v2250_v17 }
 0x2ad   :  { %v1018_v19 = vadd.s32 %v1017_v11, %v1015_v15  ;;  %v2565_v51 = vmul.f32 %v2560_v14, %v1950_v18  ;;  %vm1101_vm11 = vcmp.gt.f32.partialorder %v1950_v18, 0.0 }
 0x2ae   :  { %v999_v21 = vpop.xlane.xlu1 %998  ;;  %v2569_v61 = vsel %vm1101_vm11, 1e+30, %v2416_v37 }
 0x2af   :  { %vm1036_vm12 = vcmp.eq.s32.totalorder %v2458_v6, %v1018_v19  ;;  %v1000_v23 = vcvt.f32.s32 %v999_v21  ;;  %v1115_v2 = vsel %vm212_vm0, %v2569_v61, inf }
 0x2b0   :  { %v984_v24 = vpop.xlane.xlu0 %983  ;;  %1116 = vmin.xlane.f32.xlu1 %v1115_v2  ;;  %v1949_v28 = vsel %vm1036_vm12, 1.0, %v2250_v17 }
 0x2b1   :  { %v985_v1 = vcvt.f32.s32 %v984_v24  ;;  %v1003_v29 = vadd.s32 %v1002_v22, %v1000_v23  ;;  %v2579_v37 = vmul.f32 %v2574_v26, %v1949_v28  ;;  %vm1100_vm13 = vcmp.gt.f32.partialorder %v1949_v28, 0.0 }
 0x2b2   :  { %v2582_v31 = vsel %vm1100_vm13, 1e+30, %v2420_v45  ;;  %v260_v24 = vcvt.f32.s32 %v2526_v20 }
 0x2b3   :  { %v988_v30 = vadd.s32 %v987_v59, %v985_v1  ;;  %vm1035_vm14 = vcmp.eq.s32.totalorder %v2458_v6, %v1003_v29  ;;  %v1112_v32 = vsel %vm212_vm0, %v2582_v31, inf }
 0x2b4   :  { %1113 = vmin.xlane.f32.xlu0 %v1112_v32  ;;  %v1948_v35 = vsel %vm1035_vm14, 1.0, %v2250_v17  ;;  %v261_v1 = vshll.u32 %v260_v24, 16  ;;  %v245_v32 = vcvt.f32.s32 %v2529_v63 }
 0x2b5   :  { %vm1034_vm15 = vcmp.eq.s32.totalorder %v2458_v6, %v988_v30  ;;  %v2594_v39 = vmul.f32 %v2587_v34, %v1948_v35  ;;  %vm1099_vm1 = vcmp.gt.f32.partialorder %v1948_v35, 0.0 }
 0x2b6   :  { %v1947_v45 = vsel %vm1034_vm15, 1.0, %v2250_v17  ;;  %v2598_v41 = vsel %vm1099_vm1, 1e+30, %v2424_v53  ;;  %v320_v53 = vmul.f32 %v2128_v7, %v2484_v25 }
 0x2b7   :  { %v2601_v42 = vmul.f32 %v2591_v38, %v1947_v45  ;;  %vm1098_vm2 = vcmp.gt.f32.partialorder %v1947_v45, 0.0  ;;  %v1109_v43 = vsel %vm212_vm0, %v2598_v41, inf  ;;  %v246_v45 = vshll.u32 %v245_v32, 16 }
 0x2b8   :  { %v2606_v44 = vsel %vm1098_vm2, 1e+30, %v2426_v55  ;;  %1110 = vmin.xlane.f32.xlu1 %v1109_v43  ;;  %v322_v50 = vsel %vm321_vm3, %v2484_v25, %v320_v53  ;;  %v276_v25 = vshll.u32 %v275_v3, 16 }
 0x2b9   :  { %v1106_v46 = vsel %vm212_vm0, %v2606_v44, inf  ;;  %v325_v55 = vsel %vm323_vm4, %v324_v54, %v322_v50 }
 0x2ba   :  { %1107 = vmin.xlane.f32.xlu0 %v1106_v46  ;;  %v335_v57 = vadd.f32 1e-08, %v325_v55 }
 0x2bc   :  { %2131 = vrcp.f32 %v335_v57 }
 0x2bd   :  { %2133 = vrcp.f32 %v336_v62 }
 0x2c9   :  { %v2623_v47 = vpop.eup %2131 }
 0x2ca   :  { %v2633_v16 = vpop.eup %2133 }
 0x2d3   :  { %v273_v8 = vpop.xlane.xlu0 %272 }
 0x2d4   :  { %v274_v10 = vcvt.f32.s32 %v273_v8 }
 0x2d6   :  { %v277_v13 = vadd.s32 %v276_v25, %v274_v10 }
 0x2d7   :  { %v288_v11 = vpop.xlane.xlu1 %287 }
 0x2d8   :  { %v289_v15 = vcvt.f32.s32 %v288_v11  ;;  %vm295_vm7 = vcmp.eq.s32.totalorder %v2458_v6, %v277_v13 }
 0x2d9   :  { %v1926_v18 = vsel %vm295_vm7, 1.0, %v2250_v17 }
 0x2da   :  { %v292_v27 = vadd.s32 %v291_v58, %v289_v15  ;;  %v2627_v19 = vmul.f32 %v2623_v47, %v1926_v18  ;;  %vm359_vm8 = vcmp.gt.f32.partialorder %v1926_v18, 0.0 }
 0x2db   :  { %v2631_v12 = vsel %vm359_vm8, 1e+30, %v2441_v36 }
 0x2dc   :  { %vm296_vm9 = vcmp.eq.s32.totalorder %v2458_v6, %v292_v27  ;;  %v371_v21 = vsel %vm212_vm0, %v2631_v12, inf }
 0x2dd   :  { %v1927_v22 = vsel %vm296_vm9, 1.0, %v2250_v17  ;;  %372 = vmin.xlane.f32.xlu0 %v371_v21 }
 0x2de   :  { %v2639_v23 = vmul.f32 %v2633_v16, %v1927_v22  ;;  %vm360_vm10 = vcmp.gt.f32.partialorder %v1927_v22, 0.0 }
 0x2df   :  { %v2642_v2 = vsel %vm360_vm10, 1e+30, %v2445_v0 }
 0x2e0   :  { %v374_v36 = vsel %vm212_vm0, %v2642_v2, inf }
 0x2e1   :  { %375 = vmin.xlane.f32.xlu1 %v374_v36 }
 0x2e3   :  { %v258_v59 = vpop.xlane.xlu1 %257 }
 0x2e4   :  { %v259_v28 = vcvt.f32.s32 %v258_v59 }
 0x2e6   :  { %v262_v29 = vadd.s32 %v261_v1, %v259_v28 }
 0x2e8   :  { %vm294_vm11 = vcmp.eq.s32.totalorder %v2458_v6, %v262_v29 }
 0x2e9   :  { %v2649_v30 = vsel %vm294_vm11, 1.0, %v2250_v17 }
 0x2ea   :  { %vm358_vm12 = vcmp.gt.f32.partialorder %v2649_v30, 0.0 }
 0x2eb   :  { %v2653_v0 = vsel %vm358_vm12, 1e+30, %v2449_v52 }
 0x2ec   :  { %v368_v20 = vsel %vm212_vm0, %v2653_v0, inf }
 0x2ed   :  { %369 = vmin.xlane.f32.xlu1 %v368_v20 }
 0x2f3   :  { %v243_v35 = vpop.xlane.xlu0 %242 }
 0x2f4   :  { %v244_v43 = vcvt.f32.s32 %v243_v35 }
 0x2f6   :  { %v247_v46 = vadd.s32 %v246_v45, %v244_v43 }
 0x2f8   :  { %vm293_vm13 = vcmp.eq.s32.totalorder %v2458_v6, %v247_v46 }
 0x2f9   :  { %v2660_v7 = vsel %vm293_vm13, 1.0, %v2250_v17 }
 0x2fa   :  { %vm357_vm14 = vcmp.gt.f32.partialorder %v2660_v7, 0.0 }
 0x2fb   :  { %v2664_v52 = vsel %vm357_vm14, 1e+30, %v2453_v4 }
 0x2fc   :  { %v365_v48 = vsel %vm212_vm0, %v2664_v52, inf }
 0x2fd   :  { %366 = vmin.xlane.f32.xlu0 %v365_v48 }
 0x339   :  { %v1117_v53 = vpop.xlane.xlu1 %1116 }
 0x33a   :  { %2135 = vrsqrt.f32 %v1117_v53  ;;  %vm1121_vm15 = vcmp.eq.f32.partialorder %v2569_v61, %v1117_v53  ;;  %vm1221_vm4 = vcmp.eq.f32.partialorder %v1117_v53, inf  ;;  %v1224_v15 = vand.u32 2147483648, %v1117_v53 }
 0x33b   :  { %v1125_v63 = vsel %vm1121_vm15, %v2458_v6, 16  ;;  %vm1223_vm5 = vcmp.eq.f32.partialorder %v1117_v53, 0.0 }
 0x33c   :  { %v2671_v50 = vsel %vm212_vm0, %v1125_v63, 2147483647 }
 0x33d   :  { %v1114_v49 = vpop.xlane.xlu0 %1113  ;;  %v1173_v54 = vshra.s32 %v2671_v50, 16 }
 0x33e   :  { %2137 = vrsqrt.f32 %v1114_v49  ;;  %vm1120_vm1 = vcmp.eq.f32.partialorder %v2582_v31, %v1114_v49  ;;  %vm1214_vm6 = vcmp.eq.f32.partialorder %v1114_v49, inf  ;;  %v1217_v1 = vand.u32 2147483648, %v1114_v49 }
 0x33f   :  { %v1124_v4 = vsel %vm1120_vm1, %v2458_v6, 16  ;;  %v2676_v55 = vcvt.s32.f32 %v1173_v54  ;;  %vm1216_vm7 = vcmp.eq.f32.partialorder %v1114_v49, 0.0 }
 0x340   :  { %v2679_v56 = vsel %vm212_vm0, %v1124_v4, 2147483647 }
 0x341   :  { %v1111_v9 = vpop.xlane.xlu1 %1110  ;;  %1176 = vmin.xlane.f32.xlu1 %v2676_v55  ;;  %v1158_v60 = vshra.s32 %v2679_v56, 16 }
 0x342   :  { %2139 = vrsqrt.f32 %v1111_v9  ;;  %vm1119_vm2 = vcmp.eq.f32.partialorder %v2598_v41, %v1111_v9  ;;  %vm1207_vm8 = vcmp.eq.f32.partialorder %v1111_v9, inf  ;;  %vm1209_vm9 = vcmp.eq.f32.partialorder %v1111_v9, 0.0 }
 0x343   :  { %v1108_v57 = vpop.xlane.xlu0 %1107  ;;  %v1123_v62 = vsel %vm1119_vm2, %v2458_v6, 16  ;;  %v2687_v5 = vcvt.s32.f32 %v1158_v60  ;;  %v1210_v43 = vand.u32 2147483648, %v1111_v9 }
 0x344   :  { %2141 = vrsqrt.f32 %v1108_v57  ;;  %vm1118_vm3 = vcmp.eq.f32.partialorder %v2606_v44, %v1108_v57  ;;  %v2690_v8 = vsel %vm212_vm0, %v1123_v62, 2147483647  ;;  %vm1200_vm10 = vcmp.eq.f32.partialorder %v1108_v57, inf }
 0x345   :  { %v1122_v3 = vsel %vm1118_vm3, %v2458_v6, 16  ;;  %v1143_v13 = vshra.s32 %v2690_v8, 16  ;;  %1161 = vmin.xlane.f32.xlu0 %v2687_v5  ;;  %vm1202_vm11 = vcmp.eq.f32.partialorder %v1108_v57, 0.0 }
 0x346   :  { %v2693_v25 = vsel %vm212_vm0, %v1122_v3, 2147483647 }
 0x347   :  { %v2136_v10 = vpop.eup %2135  ;;  %v1128_v11 = vshra.s32 %v2693_v25, 16  ;;  %v2698_v27 = vcvt.s32.f32 %v1143_v13 }
 0x348   :  { %v1220_v58 = vmul.f32 %v2136_v10, %v1117_v53 }
 0x349   :  { %v2700_v18 = vcvt.s32.f32 %v1128_v11  ;;  %1146 = vmin.xlane.f32.xlu1 %v2698_v27 }
 0x34a   :  { %v1222_v21 = vsel %vm1221_vm4, %v1117_v53, %v1220_v58  ;;  %v1203_v53 = vand.u32 2147483648, %v1108_v57 }
 0x34b   :  { %v2138_v22 = vpop.eup %2137  ;;  %v1225_v24 = vsel %vm1223_vm5, %v1224_v15, %v1222_v21  ;;  %1131 = vmin.xlane.f32.xlu0 %v2700_v18 }
 0x34c   :  { %v1229_v36 = vadd.f32 1e-08, %v1225_v24  ;;  %v1213_v59 = vmul.f32 %v2138_v22, %v1114_v49 }
 0x34e   :  { %2143 = vrcp.f32 %v1229_v36  ;;  %v1215_v28 = vsel %vm1214_vm6, %v1114_v49, %v1213_v59 }
 0x34f   :  { %v2140_v29 = vpop.eup %2139  ;;  %v1218_v20 = vsel %vm1216_vm7, %v1217_v1, %v1215_v28 }
 0x350   :  { %v1228_v35 = vadd.f32 1e-08, %v1218_v20  ;;  %v1206_v45 = vmul.f32 %v2140_v29, %v1111_v9 }
 0x351   :  { %v2142_v32 = vpop.eup %2141 }
 0x352   :  { %v1199_v46 = vmul.f32 %v2142_v32, %v1108_v57  ;;  %v1208_v48 = vsel %vm1207_vm8, %v1111_v9, %v1206_v45  ;;  %2145 = vrcp.f32 %v1228_v35 }
 0x353   :  { %v1211_v63 = vsel %vm1209_vm9, %v1210_v43, %v1208_v48 }
 0x354   :  { %v1201_v54 = vsel %vm1200_vm10, %v1108_v57, %v1199_v46  ;;  %v1227_v4 = vadd.f32 1e-08, %v1211_v63 }
 0x355   :  { %v1204_v60 = vsel %vm1202_vm11, %v1203_v53, %v1201_v54 }
 0x356   :  { %v1226_v62 = vadd.f32 1e-08, %v1204_v60  ;;  %2147 = vrcp.f32 %v1227_v4 }
 0x358   :  { %2149 = vrcp.f32 %v1226_v62 }
 0x35b   :  { %v2704_v49 = vpop.eup %2143 }
 0x35c   :  { %v2708_v3 = vadd.f32 %v2704_v49, %v2560_v14 }
 0x35f   :  { %v2710_v10 = vpop.eup %2145 }
 0x360   :  { %v2714_v9 = vadd.f32 %v2710_v10, %v2574_v26 }
 0x363   :  { %v2716_v13 = vpop.eup %2147 }
 0x364   :  { %v2722_v11 = vadd.f32 %v2716_v13, %v2587_v34 }
 0x365   :  { %v2718_v57 = vpop.eup %2149 }
 0x366   :  { %v2726_v58 = vadd.f32 %v2718_v57, %v2591_v38  ;;  %v373_v14 = vpop.xlane.xlu0 %372 }
 0x367   :  { %2151 = vrsqrt.f32 %v373_v14  ;;  %vm379_vm12 = vcmp.eq.f32.partialorder %v2631_v12, %v373_v14  ;;  %vm473_vm14 = vcmp.eq.f32.partialorder %v373_v14, inf  ;;  %v476_v20 = vand.u32 2147483648, %v373_v14 }
 0x368   :  { %v383_v26 = vsel %vm379_vm12, %v2458_v6, 16  ;;  %vm475_vm15 = vcmp.eq.f32.partialorder %v373_v14, 0.0 }
 0x369   :  { %v2731_v21 = vsel %vm212_vm0, %v383_v26, 2147483647 }
 0x36a   :  { %v376_v15 = vpop.xlane.xlu1 %375  ;;  %v417_v34 = vshra.s32 %v2731_v21, 16 }
 0x36b   :  { %2153 = vrsqrt.f32 %v376_v15  ;;  %vm380_vm13 = vcmp.eq.f32.partialorder %v2642_v2, %v376_v15  ;;  %vm480_vm2 = vcmp.eq.f32.partialorder %v376_v15, inf  ;;  %v483_v53 = vand.u32 2147483648, %v376_v15 }
 0x36c   :  { %v384_v22 = vsel %vm380_vm13, %v2458_v6, 16  ;;  %v2739_v24 = vcvt.s32.f32 %v417_v34  ;;  %vm482_vm3 = vcmp.eq.f32.partialorder %v376_v15, 0.0 }
 0x36d   :  { %v2737_v38 = vsel %vm212_vm0, %v384_v22, 2147483647 }
 0x36e   :  { %v432_v36 = vshra.s32 %v2737_v38, 16  ;;  %420 = vmin.xlane.f32.xlu0 %v2739_v24 }
 0x370   :  { %v2743_v59 = vcvt.s32.f32 %v432_v36 }
 0x372   :  { %435 = vmin.xlane.f32.xlu1 %v2743_v59 }
 0x374   :  { %v2152_v1 = vpop.eup %2151 }
 0x375   :  { %v472_v28 = vmul.f32 %v2152_v1, %v373_v14 }
 0x376   :  { %v2746_v29 = vpop.xlane.xlu1 %369 }
 0x377   :  { %v474_v35 = vsel %vm473_vm14, %v373_v14, %v472_v28  ;;  %vm378_vm1 = vcmp.eq.f32.partialorder %v2653_v0, %v2746_v29 }
 0x378   :  { %v2154_v32 = vpop.eup %2153  ;;  %v477_v45 = vsel %vm475_vm15, %v476_v20, %v474_v35  ;;  %v382_v46 = vsel %vm378_vm1, %v2458_v6, 16  ;;  %v1172_v35 = vand.u32 65535, %v2671_v50 }
 0x379   :  { %v479_v43 = vmul.f32 %v2154_v32, %v376_v15  ;;  %v487_v48 = vadd.f32 1e-08, %v477_v45  ;;  %v400_v63 = vsel %vm212_vm0, %v382_v46, 2147483647  ;;  %v1157_v46 = vand.u32 65535, %v2679_v56 }
 0x37a   :  { %v402_v4 = vshra.s32 %v400_v63, 16 }
 0x37b   :  { %v481_v54 = vsel %vm480_vm2, %v376_v15, %v479_v43  ;;  %2155 = vrcp.f32 %v487_v48  ;;  %v1174_v43 = vcvt.s32.f32 %v1172_v35 }
 0x37c   :  { %v484_v60 = vsel %vm482_vm3, %v483_v53, %v481_v54  ;;  %v404_v26 = vcvt.s32.f32 %v402_v4  ;;  %v1159_v54 = vcvt.s32.f32 %v1157_v46  ;;  %v1127_v4 = vand.u32 65535, %v2693_v25 }
 0x37d   :  { %v488_v62 = vadd.f32 1e-08, %v484_v60  ;;  %v431_v25 = vand.u32 65535, %v2737_v38  ;;  %v401_v46 = vand.u32 65535, %v400_v63 }
 0x37e   :  { %405 = vmin.xlane.f32.xlu1 %v404_v26 }
 0x37f   :  { %2157 = vrcp.f32 %v488_v62  ;;  %v403_v38 = vcvt.s32.f32 %v401_v46 }
 0x380   :  { %2159 = vrsqrt.f32 %v2496_v33 }
 0x381   :  { %2161 = vrsqrt.f32 %v2746_v29 }
 0x382   :  { %2163 = vrsqrt.f32 %v2502_v40 }
 0x386   :  { %v2752_v14 = vpop.xlane.xlu0 %366 }
 0x387   :  { %vm377_vm4 = vcmp.eq.f32.partialorder %v2664_v52, %v2752_v14  ;;  %2165 = vrsqrt.f32 %v2752_v14 }
 0x388   :  { %v2756_v34 = vpop.eup %2155  ;;  %v381_v22 = vsel %vm377_vm4, %v2458_v6, 16 }
 0x389   :  { %v385_v36 = vsel %vm212_vm0, %v381_v22, 2147483647  ;;  %v2762_v15 = vadd.f32 %v2756_v34, %v2623_v47  ;;  %v1142_v47 = vand.u32 65535, %v2690_v8  ;;  %v416_v8 = vand.u32 65535, %v2731_v21 }
 0x38a   :  { %v387_v1 = vshra.s32 %v385_v36, 16 }
 0x38b   :  { %v1144_v50 = vcvt.s32.f32 %v1142_v47  ;;  %v386_v47 = vand.u32 65535, %v385_v36 }
 0x38c   :  { %v2764_v28 = vpop.eup %2157  ;;  %v389_v20 = vcvt.s32.f32 %v387_v1 }
 0x38d   :  { %v2768_v32 = vadd.f32 %v2764_v28, %v2633_v16 }
 0x38e   :  { %390 = vmin.xlane.f32.xlu0 %v389_v20 }
 0x3ca   :  { %v1177_v45 = vpop.xlane.xlu1 %1176 }
 0x3cb   :  { %vm1178_vm5 = vcmp.eq.f32.partialorder %v2676_v55, %v1177_v45  ;;  %v1129_v55 = vcvt.s32.f32 %v1127_v4 }
 0x3cc   :  { %v1179_v48 = vsel %vm1178_vm5, %v1174_v43, inf  ;;  %v433_v43 = vcvt.s32.f32 %v431_v25 }
 0x3cd   :  { %1180 = vmin.xlane.f32.xlu1 %v1179_v48 }
 0x3ce   :  { %v1162_v53 = vpop.xlane.xlu0 %1161 }
 0x3cf   :  { %vm1163_vm6 = vcmp.eq.f32.partialorder %v2687_v5, %v1162_v53  ;;  %v418_v5 = vcvt.s32.f32 %v416_v8  ;;  %v1168_v63 = vcvt.f32.s32 %v1162_v53 }
 0x3d0   :  { %v1164_v16 = vsel %vm1163_vm6, %v1159_v54, inf  ;;  %v388_v54 = vcvt.s32.f32 %v386_v47  ;;  %vm314_vm6 = vcmp.eq.f32.partialorder %v2496_v33, inf }
 0x3d1   :  { %1165 = vmin.xlane.f32.xlu0 %v1164_v16  ;;  %v1183_v16 = vcvt.f32.s32 %v1177_v45  ;;  %v1169_v8 = vshll.u32 %v1168_v63, 16 }
 0x3d2   :  { %v1147_v60 = vpop.xlane.xlu1 %1146 }
 0x3d3   :  { %vm1148_vm7 = vcmp.eq.f32.partialorder %v2698_v27, %v1147_v60 }
 0x3d4   :  { %v1132_v62 = vpop.xlane.xlu0 %1131  ;;  %v1149_v22 = vsel %vm1148_vm7, %v1144_v50, inf  ;;  %v1184_v50 = vshll.u32 %v1183_v16, 16  ;;  %vm466_vm7 = vcmp.eq.f32.partialorder %v2746_v29, inf }
 0x3d5   :  { %vm1133_vm8 = vcmp.eq.f32.partialorder %v2700_v18, %v1132_v62  ;;  %1150 = vmin.xlane.f32.xlu1 %v1149_v22  ;;  %v1138_v25 = vcvt.f32.s32 %v1132_v62 }
 0x3d6   :  { %v1134_v56 = vsel %vm1133_vm8, %v1129_v55, inf  ;;  %vm316_vm8 = vcmp.eq.f32.partialorder %v2496_v33, 0.0 }
 0x3d7   :  { %1135 = vmin.xlane.f32.xlu0 %v1134_v56  ;;  %v1153_v56 = vcvt.f32.s32 %v1147_v60  ;;  %v1139_v62 = vshll.u32 %v1138_v25, 16 }
 0x3f7   :  { %v2780_v1 = vpop.xlane.xlu0 %420 }
 0x3f8   :  { %vm422_vm9 = vcmp.eq.f32.partialorder %v2739_v24, %v2780_v1  ;;  %v427_v25 = vcvt.f32.s32 %v2780_v1 }
 0x3f9   :  { %v423_v35 = vsel %vm422_vm9, %v418_v5, inf  ;;  %vm468_vm9 = vcmp.eq.f32.partialorder %v2746_v29, 0.0 }
 0x3fa   :  { %424 = vmin.xlane.f32.xlu0 %v423_v35 }
 0x3fb   :  { %v2784_v27 = vpop.xlane.xlu1 %435 }
 0x3fc   :  { %vm437_vm10 = vcmp.eq.f32.partialorder %v2743_v59, %v2784_v27 }
 0x3fd   :  { %v438_v18 = vsel %vm437_vm10, %v433_v43, inf }
 0x3fe   :  { %439 = vmin.xlane.f32.xlu1 %v438_v18  ;;  %v1154_v18 = vshll.u32 %v1153_v56, 16 }
 0x407   :  { %v2788_v21 = vpop.xlane.xlu1 %405 }
 0x408   :  { %vm407_vm11 = vcmp.eq.f32.partialorder %v404_v26, %v2788_v21 }
 0x409   :  { %v408_v48 = vsel %vm407_vm11, %v403_v38, inf }
 0x40a   :  { %409 = vmin.xlane.f32.xlu1 %v408_v48 }
 0x417   :  { %v2791_v24 = vpop.xlane.xlu0 %390 }
 0x418   :  { %vm392_vm12 = vcmp.eq.f32.partialorder %v389_v20, %v2791_v24 }
 0x419   :  { %v393_v4 = vsel %vm392_vm12, %v388_v54, inf }
 0x41a   :  { %394 = vmin.xlane.f32.xlu0 %v393_v4 }
 0x456   :  { %v1181_v59 = vpop.xlane.xlu1 %1180 }
 0x457   :  { %v1182_v55 = vcvt.f32.s32 %v1181_v59 }
 0x459   :  { %v1185_v22 = vadd.s32 %v1184_v50, %v1182_v55 }
 0x45a   :  { %v1166_v26 = vpop.xlane.xlu0 %1165 }
 0x45b   :  { %vm1189_vm13 = vcmp.eq.s32.totalorder %v2458_v6, %v1185_v22  ;;  %v1167_v36 = vcvt.f32.s32 %v1166_v26  ;;  %v317_v26 = vand.u32 2147483648, %v2496_v33 }
 0x45c   :  { %v1954_v5 = vsel %vm1189_vm13, 1.0, %v2250_v17 }
 0x45d   :  { %vm1253_vm14 = vcmp.gt.f32.partialorder %v1954_v5, 0.0  ;;  %v1241_v20 = vmul.f32 %v2704_v49, %v1954_v5  ;;  %v1170_v35 = vadd.s32 %v1169_v8, %v1167_v36  ;;  %v469_v36 = vand.u32 2147483648, %v2746_v29 }
 0x45e   :  { %v1151_v43 = vpop.xlane.xlu1 %1150  ;;  %v2798_v45 = vsel %vm1253_vm14, 1e+30, %v2569_v61  ;;  %vm307_vm14 = vcmp.eq.f32.partialorder %v2502_v40, inf }
 0x45f   :  { %v1152_v53 = vcvt.f32.s32 %v1151_v43  ;;  %v1267_v60 = vsel %vm212_vm0, %v2798_v45, inf  ;;  %v2803_v38 = vadd.f32 %v1241_v20, %v2565_v51  ;;  %vm1188_vm15 = vcmp.eq.s32.totalorder %v2458_v6, %v1170_v35 }
 0x460   :  { %v1136_v46 = vpop.xlane.xlu0 %1135  ;;  %1268 = vmin.xlane.f32.xlu1 %v1267_v60  ;;  %v1953_v47 = vsel %vm1188_vm15, 1.0, %v2250_v17  ;;  %v442_v20 = vcvt.f32.s32 %v2784_v27  ;;  %vm459_vm15 = vcmp.eq.f32.partialorder %v2752_v14, inf }
 0x461   :  { %v1137_v48 = vcvt.f32.s32 %v1136_v46  ;;  %v1155_v49 = vadd.s32 %v1154_v18, %v1152_v53  ;;  %vm1252_vm1 = vcmp.gt.f32.partialorder %v1953_v47, 0.0  ;;  %v1240_v61 = vmul.f32 %v2710_v10, %v1953_v47 }
 0x462   :  { %v2810_v4 = vsel %vm1252_vm1, 1e+30, %v2582_v31  ;;  %v428_v18 = vshll.u32 %v427_v25, 16  ;;  %vm309_vm1 = vcmp.eq.f32.partialorder %v2502_v40, 0.0 }
 0x463   :  { %v1140_v54 = vadd.s32 %v1139_v62, %v1137_v48  ;;  %vm1187_vm2 = vcmp.eq.s32.totalorder %v2458_v6, %v1155_v49  ;;  %v1264_v51 = vsel %vm212_vm0, %v2810_v4, inf  ;;  %v2815_v16 = vadd.f32 %v1240_v61, %v2579_v37 }
 0x464   :  { %v1952_v59 = vsel %vm1187_vm2, 1.0, %v2250_v17  ;;  %1265 = vmin.xlane.f32.xlu0 %v1264_v51  ;;  %v443_v48 = vshll.u32 %v442_v20, 16  ;;  %vm461_vm2 = vcmp.eq.f32.partialorder %v2752_v14, 0.0 }
 0x465   :  { %vm1186_vm3 = vcmp.eq.s32.totalorder %v2458_v6, %v1140_v54  ;;  %vm1251_vm4 = vcmp.gt.f32.partialorder %v1952_v59, 0.0  ;;  %v1239_v50 = vmul.f32 %v2716_v13, %v1952_v59 }
 0x466   :  { %v1951_v10 = vsel %vm1186_vm3, 1.0, %v2250_v17  ;;  %v2822_v55 = vsel %vm1251_vm4, 1e+30, %v2598_v41  ;;  %v2160_v41 = vpop.eup %2159 }
 0x467   :  { %vm1250_vm5 = vcmp.gt.f32.partialorder %v1951_v10, 0.0  ;;  %v1238_v31 = vmul.f32 %v2718_v57, %v1951_v10  ;;  %v1261_v37 = vsel %vm212_vm0, %v2822_v55, inf  ;;  %v2828_v63 = vadd.f32 %v1239_v50, %v2594_v39  ;;  %v2162_v57 = vpop.eup %2161 }
 0x468   :  { %v2831_v22 = vsel %vm1250_vm5, 1e+30, %v2606_v44  ;;  %1262 = vmin.xlane.f32.xlu1 %v1261_v37  ;;  %v313_v39 = vmul.f32 %v2160_v41, %v2496_v33  ;;  %v465_v44 = vmul.f32 %v2162_v57, %v2746_v29  ;;  %v2164_v1 = vpop.eup %2163  ;;  %v462_v57 = vand.u32 2147483648, %v2752_v14 }
 0x469   :  { %v1258_v13 = vsel %vm212_vm0, %v2831_v22, inf  ;;  %v2836_v56 = vadd.f32 %v1238_v31, %v2601_v42  ;;  %v2166_v54 = vpop.eup %2165  ;;  %v306_v61 = vmul.f32 %v2164_v1, %v2502_v40 }
 0x46a   :  { %1259 = vmin.xlane.f32.xlu0 %v1258_v13  ;;  %v315_v42 = vsel %vm314_vm6, %v2496_v33, %v313_v39  ;;  %v467_v8 = vsel %vm466_vm7, %v2746_v29, %v465_v44  ;;  %v458_v51 = vmul.f32 %v2166_v54, %v2752_v14 }
 0x46b   :  { %v318_v5 = vsel %vm316_vm8, %v317_v26, %v315_v42  ;;  %v470_v35 = vsel %vm468_vm9, %v469_v36, %v467_v8 }
 0x46c   :  { %v334_v60 = vadd.f32 1e-08, %v318_v5  ;;  %v486_v62 = vadd.f32 1e-08, %v470_v35 }
 0x46e   :  { %2167 = vrcp.f32 %v334_v60 }
 0x46f   :  { %2169 = vrcp.f32 %v486_v62 }
 0x47b   :  { %v2887_v25 = vpop.eup %2167 }
 0x47c   :  { %v2890_v5 = vpop.eup %2169  ;;  %v346_v20 = vmul.f32 %v2887_v25, %v2649_v30 }
 0x483   :  { %v425_v43 = vpop.xlane.xlu0 %424 }
 0x484   :  { %v426_v53 = vcvt.f32.s32 %v425_v43 }
 0x486   :  { %v429_v49 = vadd.s32 %v428_v18, %v426_v53  ;;  %v397_v53 = vcvt.f32.s32 %v2791_v24 }
 0x487   :  { %v440_v46 = vpop.xlane.xlu1 %439 }
 0x488   :  { %v441_v47 = vcvt.f32.s32 %v440_v46  ;;  %vm447_vm10 = vcmp.eq.s32.totalorder %v2458_v6, %v429_v49  ;;  %v398_v46 = vshll.u32 %v397_v53, 16 }
 0x489   :  { %v1930_v29 = vsel %vm447_vm10, 1.0, %v2250_v17 }
 0x48a   :  { %v444_v33 = vadd.s32 %v443_v48, %v441_v47  ;;  %vm511_vm12 = vcmp.gt.f32.partialorder %v1930_v29, 0.0  ;;  %v499_v27 = vmul.f32 %v2756_v34, %v1930_v29 }
 0x48b   :  { %v2861_v59 = vsel %vm511_vm12, 1e+30, %v2631_v12  ;;  %v412_v12 = vcvt.f32.s32 %v2788_v21 }
 0x48c   :  { %vm448_vm11 = vcmp.eq.s32.totalorder %v2458_v6, %v444_v33  ;;  %v523_v10 = vsel %vm212_vm0, %v2861_v59, inf  ;;  %v2867_v31 = vadd.f32 %v499_v27, %v2627_v19  ;;  %v308_v19 = vsel %vm307_vm14, %v2502_v40, %v306_v61 }
 0x48d   :  { %v1931_v50 = vsel %vm448_vm11, 1.0, %v2250_v17  ;;  %524 = vmin.xlane.f32.xlu0 %v523_v10  ;;  %v413_v44 = vshll.u32 %v412_v12, 16 }
 0x48e   :  { %vm512_vm13 = vcmp.gt.f32.partialorder %v1931_v50, 0.0  ;;  %v500_v37 = vmul.f32 %v2764_v28, %v1931_v50  ;;  %v310_v28 = vand.u32 2147483648, %v2502_v40 }
 0x48f   :  { %v2871_v34 = vsel %vm512_vm13, 1e+30, %v2642_v2  ;;  %v460_v2 = vsel %vm459_vm15, %v2752_v14, %v458_v51 }
 0x490   :  { %v526_v13 = vsel %vm212_vm0, %v2871_v34, inf  ;;  %v2878_v41 = vadd.f32 %v500_v37, %v2639_v23  ;;  %v311_v39 = vsel %vm309_vm1, %v310_v28, %v308_v19  ;;  %v463_v42 = vsel %vm461_vm2, %v462_v57, %v460_v2 }
 0x491   :  { %527 = vmin.xlane.f32.xlu1 %v526_v13  ;;  %v333_v8 = vadd.f32 1e-08, %v311_v39  ;;  %v485_v36 = vadd.f32 1e-08, %v463_v42 }
 0x493   :  { %v410_v21 = vpop.xlane.xlu1 %409  ;;  %2171 = vrcp.f32 %v333_v8 }
 0x494   :  { %v411_v23 = vcvt.f32.s32 %v410_v21  ;;  %2173 = vrcp.f32 %v485_v36 }
 0x496   :  { %v414_v26 = vadd.s32 %v413_v44, %v411_v23 }
 0x498   :  { %vm446_vm3 = vcmp.eq.s32.totalorder %v2458_v6, %v414_v26 }
 0x499   :  { %v1929_v40 = vsel %vm446_vm3, 1.0, %v2250_v17 }
 0x49a   :  { %vm510_vm4 = vcmp.gt.f32.partialorder %v1929_v40, 0.0  ;;  %v498_v14 = vmul.f32 %v2890_v5, %v1929_v40 }
 0x49b   :  { %v2897_v35 = vsel %vm510_vm4, 1e+30, %v2653_v0 }
 0x49c   :  { %v520_v43 = vsel %vm212_vm0, %v2897_v35, inf  ;;  %v2901_v18 = vadd.f32 %v498_v14, %v346_v20 }
 0x49d   :  { %521 = vmin.xlane.f32.xlu1 %v520_v43 }
 0x4a0   :  { %v2904_v48 = vpop.eup %2171 }
 0x4a1   :  { %v2907_v49 = vpop.eup %2173  ;;  %v345_v47 = vmul.f32 %v2904_v48, %v2660_v7 }
 0x4a3   :  { %v395_v60 = vpop.xlane.xlu0 %394 }
 0x4a4   :  { %v396_v62 = vcvt.f32.s32 %v395_v60 }
 0x4a6   :  { %v399_v30 = vadd.s32 %v398_v46, %v396_v62 }
 0x4a8   :  { %vm445_vm5 = vcmp.eq.s32.totalorder %v2458_v6, %v399_v30 }
 0x4a9   :  { %v1928_v0 = vsel %vm445_vm5, 1.0, %v2250_v17 }
 0x4aa   :  { %vm509_vm6 = vcmp.gt.f32.partialorder %v1928_v0, 0.0  ;;  %v497_v1 = vmul.f32 %v2907_v49, %v1928_v0 }
 0x4ab   :  { %v2914_v24 = vsel %vm509_vm6, 1e+30, %v2664_v52 }
 0x4ac   :  { %v517_v54 = vsel %vm212_vm0, %v2914_v24, inf  ;;  %v2918_v33 = vadd.f32 %v497_v1, %v345_v47 }
 0x4ad   :  { %518 = vmin.xlane.f32.xlu0 %v517_v54 }
 0x4e9   :  { %v1269_v29 = vpop.xlane.xlu1 %1268 }
 0x4ea   :  { %2175 = vrsqrt.f32 %v1269_v29  ;;  %vm1273_vm7 = vcmp.eq.f32.partialorder %v2798_v45, %v1269_v29  ;;  %vm1373_vm11 = vcmp.eq.f32.partialorder %v1269_v29, inf  ;;  %v1376_v39 = vand.u32 2147483648, %v1269_v29 }
 0x4eb   :  { %v1277_v27 = vsel %vm1273_vm7, %v2458_v6, 16  ;;  %vm1375_vm12 = vcmp.eq.f32.partialorder %v1269_v29, 0.0 }
 0x4ec   :  { %v2923_v7 = vsel %vm212_vm0, %v1277_v27, 2147483647 }
 0x4ed   :  { %v1266_v61 = vpop.xlane.xlu0 %1265  ;;  %v1325_v51 = vshra.s32 %v2923_v7, 16 }
 0x4ee   :  { %2177 = vrsqrt.f32 %v1266_v61  ;;  %vm1272_vm8 = vcmp.eq.f32.partialorder %v2810_v4, %v1266_v61  ;;  %vm1366_vm13 = vcmp.eq.f32.partialorder %v1266_v61, inf  ;;  %v1369_v20 = vand.u32 2147483648, %v1266_v61 }
 0x4ef   :  { %v2926_v52 = vcvt.s32.f32 %v1325_v51  ;;  %v1276_v10 = vsel %vm1272_vm8, %v2458_v6, 16  ;;  %vm1368_vm14 = vcmp.eq.f32.partialorder %v1266_v61, 0.0 }
 0x4f0   :  { %v2932_v37 = vsel %vm212_vm0, %v1276_v10, 2147483647 }
 0x4f1   :  { %v1263_v50 = vpop.xlane.xlu1 %1262  ;;  %1328 = vmin.xlane.f32.xlu1 %v2926_v52  ;;  %v1310_v12 = vshra.s32 %v2932_v37, 16 }
 0x4f2   :  { %2179 = vrsqrt.f32 %v1263_v50  ;;  %vm1271_vm9 = vcmp.eq.f32.partialorder %v2822_v55, %v1263_v50  ;;  %vm1359_vm15 = vcmp.eq.f32.partialorder %v1263_v50, inf  ;;  %v1362_v30 = vand.u32 2147483648, %v1263_v50 }
 0x4f3   :  { %v1260_v45 = vpop.xlane.xlu0 %1259  ;;  %v1275_v13 = vsel %vm1271_vm9, %v2458_v6, 16  ;;  %v2945_v57 = vcvt.s32.f32 %v1310_v12  ;;  %vm1361_vm1 = vcmp.eq.f32.partialorder %v1263_v50, 0.0 }
 0x4f4   :  { %2181 = vrsqrt.f32 %v1260_v45  ;;  %vm1270_vm10 = vcmp.eq.f32.partialorder %v2831_v22, %v1260_v45  ;;  %v2940_v19 = vsel %vm212_vm0, %v1275_v13, 2147483647  ;;  %vm1352_vm2 = vcmp.eq.f32.partialorder %v1260_v45, inf }
 0x4f5   :  { %v1274_v4 = vsel %vm1270_vm10, %v2458_v6, 16  ;;  %v1295_v21 = vshra.s32 %v2940_v19, 16  ;;  %1313 = vmin.xlane.f32.xlu0 %v2945_v57  ;;  %v1355_v1 = vand.u32 2147483648, %v1260_v45  ;;  %vm1354_vm3 = vcmp.eq.f32.partialorder %v1260_v45, 0.0 }
 0x4f6   :  { %v2943_v28 = vsel %vm212_vm0, %v1274_v4, 2147483647 }
 0x4f7   :  { %v2176_v2 = vpop.eup %2175  ;;  %v1280_v55 = vshra.s32 %v2943_v28, 16  ;;  %v2950_v44 = vcvt.s32.f32 %v1295_v21 }
 0x4f8   :  { %v1372_v22 = vmul.f32 %v2176_v2, %v1269_v29 }
 0x4f9   :  { %v2952_v23 = vcvt.s32.f32 %v1280_v55  ;;  %1298 = vmin.xlane.f32.xlu1 %v2950_v44 }
 0x4fa   :  { %v1374_v42 = vsel %vm1373_vm11, %v1269_v29, %v1372_v22 }
 0x4fb   :  { %v1377_v26 = vsel %vm1375_vm12, %v1376_v39, %v1374_v42  ;;  %v2178_v8 = vpop.eup %2177  ;;  %1283 = vmin.xlane.f32.xlu0 %v2952_v23 }
 0x4fc   :  { %v1381_v36 = vadd.f32 1e-08, %v1377_v26  ;;  %v1365_v40 = vmul.f32 %v2178_v8, %v1266_v61 }
 0x4fe   :  { %2183 = vrcp.f32 %v1381_v36  ;;  %v1367_v43 = vsel %vm1366_vm13, %v1266_v61, %v1365_v40 }
 0x4ff   :  { %v2180_v14 = vpop.eup %2179  ;;  %v1370_v60 = vsel %vm1368_vm14, %v1369_v20, %v1367_v43 }
 0x500   :  { %v1358_v46 = vmul.f32 %v2180_v14, %v1263_v50  ;;  %v1380_v62 = vadd.f32 1e-08, %v1370_v60 }
 0x501   :  { %v2182_v53 = vpop.eup %2181 }
 0x502   :  { %v1351_v0 = vmul.f32 %v2182_v53, %v1260_v45  ;;  %v1360_v47 = vsel %vm1359_vm15, %v1263_v50, %v1358_v46  ;;  %2185 = vrcp.f32 %v1380_v62 }
 0x503   :  { %v1363_v54 = vsel %vm1361_vm1, %v1362_v30, %v1360_v47 }
 0x504   :  { %v1353_v29 = vsel %vm1352_vm2, %v1260_v45, %v1351_v0  ;;  %v1379_v27 = vadd.f32 1e-08, %v1363_v54 }
 0x505   :  { %v1356_v51 = vsel %vm1354_vm3, %v1355_v1, %v1353_v29 }
 0x506   :  { %v1378_v10 = vadd.f32 1e-08, %v1356_v51  ;;  %2187 = vrcp.f32 %v1379_v27 }
 0x508   :  { %2189 = vrcp.f32 %v1378_v10 }
 0x50b   :  { %v2956_v61 = vpop.eup %2183 }
 0x50c   :  { %v2960_v12 = vadd.f32 %v2956_v61, %v2708_v3 }
 0x50f   :  { %v2962_v13 = vpop.eup %2185 }
 0x510   :  { %v2966_v50 = vadd.f32 %v2962_v13, %v2714_v9 }
 0x513   :  { %v2968_v4 = vpop.eup %2187 }
 0x514   :  { %v2974_v2 = vadd.f32 %v2968_v4, %v2722_v11 }
 0x515   :  { %v2970_v45 = vpop.eup %2189 }
 0x516   :  { %v2978_v21 = vadd.f32 %v2970_v45, %v2726_v58  ;;  %v525_v3 = vpop.xlane.xlu0 %524 }
 0x517   :  { %2191 = vrsqrt.f32 %v525_v3  ;;  %vm531_vm4 = vcmp.eq.f32.partialorder %v2861_v59, %v525_v3  ;;  %vm625_vm6 = vcmp.eq.f32.partialorder %v525_v3, inf  ;;  %v628_v20 = vand.u32 2147483648, %v525_v3 }
 0x518   :  { %v535_v9 = vsel %vm531_vm4, %v2458_v6, 16  ;;  %vm627_vm8 = vcmp.eq.f32.partialorder %v525_v3, 0.0 }
 0x519   :  { %v2984_v22 = vsel %vm212_vm0, %v535_v9, 2147483647 }
 0x51a   :  { %v528_v55 = vpop.xlane.xlu1 %527  ;;  %v569_v39 = vshra.s32 %v2984_v22, 16 }
 0x51b   :  { %2193 = vrsqrt.f32 %v528_v55  ;;  %vm532_vm5 = vcmp.eq.f32.partialorder %v2871_v34, %v528_v55  ;;  %vm632_vm9 = vcmp.eq.f32.partialorder %v528_v55, inf  ;;  %v635_v46 = vand.u32 2147483648, %v528_v55 }
 0x51c   :  { %v536_v11 = vsel %vm532_vm5, %v2458_v6, 16  ;;  %v2992_v26 = vcvt.s32.f32 %v569_v39  ;;  %vm634_vm10 = vcmp.eq.f32.partialorder %v528_v55, 0.0  ;;  %vm768_vm5 = vcmask 261120  }
 0x51d   :  { %v2989_v58 = vsel %vm212_vm0, %v536_v11, 2147483647 }
 0x51e   :  { %v584_v42 = vshra.s32 %v2989_v58, 16  ;;  %572 = vmin.xlane.f32.xlu0 %v2992_v26 }
 0x520   :  { %v2994_v59 = vcvt.s32.f32 %v584_v42 }
 0x522   :  { %587 = vmin.xlane.f32.xlu1 %v2994_v59 }
 0x524   :  { %v2192_v34 = vpop.eup %2191 }
 0x525   :  { %v624_v36 = vmul.f32 %v2192_v34, %v525_v3 }
 0x526   :  { %v2998_v8 = vpop.xlane.xlu1 %521 }
 0x527   :  { %vm530_vm7 = vcmp.eq.f32.partialorder %v2897_v35, %v2998_v8  ;;  %v626_v14 = vsel %vm625_vm6, %v525_v3, %v624_v36 }
 0x528   :  { %v2194_v40 = vpop.eup %2193  ;;  %v534_v53 = vsel %vm530_vm7, %v2458_v6, 16  ;;  %v629_v60 = vsel %vm627_vm8, %v628_v20, %v626_v14  ;;  %v1279_v20 = vand.u32 65535, %v2943_v28 }
 0x529   :  { %v631_v43 = vmul.f32 %v2194_v40, %v528_v55  ;;  %v552_v62 = vsel %vm212_vm0, %v534_v53, 2147483647  ;;  %v639_v30 = vadd.f32 1e-08, %v629_v60  ;;  %v1294_v40 = vand.u32 65535, %v2940_v19 }
 0x52a   :  { %v554_v47 = vshra.s32 %v552_v62, 16  ;;  %v1281_v19 = vcvt.s32.f32 %v1279_v20  ;;  %v568_v60 = vand.u32 65535, %v2984_v22  ;;  %v553_v22 = vand.u32 65535, %v552_v62  ;;  %v1967_v62 = vld [vmem:[%s3256_s3 + $0x10] sm:$0xff] }
 0x52b   :  { %v633_v0 = vsel %vm632_vm9, %v528_v55, %v631_v43  ;;  %2195 = vrcp.f32 %v639_v30  ;;  %v1296_v53 = vcvt.s32.f32 %v1294_v40  ;;  %v1673_v40 = vld [vmem:[%s3260_s7 + $0x10] sm:$0xff] }
 0x52c   :  { %v636_v1 = vsel %vm634_vm10, %v635_v46, %v633_v0  ;;  %v556_v29 = vcvt.s32.f32 %v554_v47  ;;  %v570_v30 = vcvt.s32.f32 %v568_v60  ;;  %vm618_vm10 = vcmp.eq.f32.partialorder %v2998_v8, inf }
 0x52d   :  { %v640_v54 = vadd.f32 1e-08, %v636_v1 }
 0x52e   :  { %557 = vmin.xlane.f32.xlu1 %v556_v29 }
 0x52f   :  { %2197 = vrcp.f32 %v640_v54 }
 0x530   :  { %2199 = vrcp.f32 %v2960_v12 }
 0x531   :  { %2201 = vrcp.f32 %v2966_v50 }
 0x532   :  { %2203 = vrcp.f32 %v2974_v2 }
 0x533   :  { %2205 = vrsqrt.f32 %v2998_v8 }
 0x534   :  { %2207 = vrcp.f32 %v2978_v21 }
 0x536   :  { %v3004_v35 = vpop.xlane.xlu0 %518 }
 0x537   :  { %vm529_vm11 = vcmp.eq.f32.partialorder %v2914_v24, %v3004_v35  ;;  %v1324_v24 = vand.u32 65535, %v2923_v7  ;;  %2209 = vrsqrt.f32 %v3004_v35 }
 0x538   :  { %v533_v27 = vsel %vm529_vm11, %v2458_v6, 16  ;;  %v3009_v51 = vpop.eup %2195  ;;  %vm620_vm11 = vcmp.eq.f32.partialorder %v2998_v8, 0.0 }
 0x539   :  { %v537_v10 = vsel %vm212_vm0, %v533_v27, 2147483647  ;;  %v3014_v55 = vadd.f32 %v3009_v51, %v2762_v15  ;;  %v1326_v34 = vcvt.s32.f32 %v1324_v24  ;;  %v1309_v15 = vand.u32 65535, %v2932_v37 }
 0x53a   :  { %v539_v3 = vshra.s32 %v537_v10, 16 }
 0x53c   :  { %v3016_v9 = vpop.eup %2197  ;;  %v541_v11 = vcvt.s32.f32 %v539_v3  ;;  %v538_v3 = vand.u32 65535, %v537_v10  ;;  %v1543_v10 = vld [vmem:[%s3258_s5 + $0x8] sm:$0xff] }
 0x53d   :  { %v3020_v39 = vadd.f32 %v3016_v9, %v2768_v32  ;;  %v1311_v32 = vcvt.s32.f32 %v1309_v15  ;;  %v1968_v15 = vld [vmem:[%s3256_s3 + $0x18] sm:$0xff] }
 0x53e   :  { %542 = vmin.xlane.f32.xlu0 %v541_v11  ;;  %v540_v24 = vcvt.s32.f32 %v538_v3 }
 0x57a   :  { %v3023_v42 = vpop.xlane.xlu1 %1328 }
 0x57b   :  { %vm1330_vm12 = vcmp.eq.f32.partialorder %v2926_v52, %v3023_v42  ;;  %v1335_v20 = vcvt.f32.s32 %v3023_v42 }
 0x57c   :  { %v1331_v36 = vsel %vm1330_vm12, %v1326_v34, inf  ;;  %vm611_vm12 = vcmp.eq.f32.partialorder %v3004_v35, inf }
 0x57d   :  { %1332 = vmin.xlane.f32.xlu1 %v1331_v36  ;;  %v673_v36 = vld [vmem:[%s3255_s2] sm:$0xff] }
 0x57e   :  { %v3030_v14 = vpop.xlane.xlu0 %1313  ;;  %2023 = vmatprep.mubr.msk.f32.mxu0 %vm212_vm0, %v673_v36 }
 0x57f   :  { %vm1315_vm13 = vcmp.eq.f32.partialorder %v2945_v57, %v3030_v14  ;;  %v1959_v57 = vld [vmem:[%s3255_s2 + $0x10] sm:$0xff] }
 0x580   :  { %v1316_v7 = vsel %vm1315_vm13, %v1311_v32, inf  ;;  %2034 = vmatprep.mubr.msk.f32.mxu1 %vm212_vm0, %v1959_v57  ;;  %vm613_vm13 = vcmp.eq.f32.partialorder %v3004_v35, 0.0 }
 0x581   :  { %1317 = vmin.xlane.f32.xlu0 %v1316_v7  ;;  %v1336_v7 = vshll.u32 %v1335_v20, 16 }
 0x582   :  { %v3034_v43 = vpop.xlane.xlu1 %1298 }
 0x583   :  { %vm1300_vm14 = vcmp.eq.f32.partialorder %v2950_v44, %v3034_v43  ;;  %v583_v44 = vand.u32 65535, %v2989_v58  ;;  %v555_v58 = vcvt.s32.f32 %v553_v22 }
 0x584   :  { %v3038_v52 = vpop.xlane.xlu0 %1283  ;;  %v1301_v37 = vsel %vm1300_vm14, %v1296_v53, inf }
 0x585   :  { %vm1285_vm15 = vcmp.eq.f32.partialorder %v2952_v23, %v3038_v52  ;;  %1302 = vmin.xlane.f32.xlu1 %v1301_v37  ;;  %v585_v0 = vcvt.s32.f32 %v583_v44  ;;  %v1290_v44 = vcvt.f32.s32 %v3038_v52 }
 0x586   :  { %v1286_v28 = vsel %vm1285_vm15, %v1281_v19, inf  ;;  %v1320_v19 = vcvt.f32.s32 %v3030_v14 }
 0x587   :  { %1287 = vmin.xlane.f32.xlu0 %v1286_v28  ;;  %v1305_v28 = vcvt.f32.s32 %v3034_v43 }
 0x588   :  { %v1321_v60 = vshll.u32 %v1320_v19, 16 }
 0x589   :  { %v1306_v2 = vshll.u32 %v1305_v28, 16 }
 0x5a7   :  { %v3048_v46 = vpop.xlane.xlu0 %572 }
 0x5a8   :  { %vm574_vm1 = vcmp.eq.f32.partialorder %v2992_v26, %v3048_v46  ;;  %v579_v28 = vcvt.f32.s32 %v3048_v46 }
 0x5a9   :  { %v575_v47 = vsel %vm574_vm1, %v570_v30, inf }
 0x5aa   :  { %576 = vmin.xlane.f32.xlu0 %v575_v47 }
 0x5ab   :  { %v3052_v23 = vpop.xlane.xlu1 %587 }
 0x5ac   :  { %vm589_vm2 = vcmp.eq.f32.partialorder %v2994_v59, %v3052_v23  ;;  %v771_v59 = vld [vmem:[%s3256_s3] sm:$0xff] }
 0x5ad   :  { %v590_v1 = vsel %vm589_vm2, %v585_v0, inf  ;;  %773 = vst.msk [vmem:[#allocation2 + $0x10] sm:$0xff] %vm768_vm5, %v771_v59  ;;  %v2200_v0 = vpop.eup %2199  ;;  %vm1518_vm2 = vcmask 523520  }
 0x5ae   :  { %591 = vmin.xlane.f32.xlu1 %v590_v1  ;;  %v2202_v59 = vpop.eup %2201 }
 0x5b7   :  { %v3056_v54 = vpop.xlane.xlu1 %557 }
 0x5b8   :  { %vm559_vm3 = vcmp.eq.f32.partialorder %v556_v29, %v3056_v54  ;;  %v1545_v29 = vld [vmem:[%s3258_s5 + $0x18] sm:$0xff] }
 0x5b9   :  { %v560_v27 = vsel %vm559_vm3, %v555_v58, inf  ;;  %v1291_v58 = vshll.u32 %v1290_v44, 16 }
 0x5ba   :  { %561 = vmin.xlane.f32.xlu1 %v560_v27 }
 0x5c7   :  { %v3059_v26 = vpop.xlane.xlu0 %542 }
 0x5c8   :  { %vm544_vm4 = vcmp.eq.f32.partialorder %v541_v11, %v3059_v26  ;;  %v1671_v11 = vld [vmem:[%s3260_s7] sm:$0xff] }
 0x5c9   :  { %v545_v34 = vsel %vm544_vm4, %v540_v24, inf  ;;  %vm1903_vm4 = vcmask 523264  }
 0x5ca   :  { %546 = vmin.xlane.f32.xlu0 %v545_v34 }
 0x5cb   :  { %1528 = vrot.lane.b32.xlu1 %v1968_v15, %s2251_s14 }
 0x5e0   :  { %1526 = vrot.lane.b32.xlu0 %v1967_v62, %s2251_s14 }
 0x5e4   :  { %1563 = vperm.xlu0 %2108, %v1545_v29   ;;  %v2204_v29 = vpop.eup %2203 }
 0x5e5   :  { %v2206_v36 = vpop.eup %2205 }
 0x5e8   :  { %1553 = vperm.xlu0 %2108, %v1543_v10  }
 0x5ec   :  { %1677 = vperm.xlu0 %2108, %v1671_v11  }
 0x5f0   :  { %1687 = vperm.xlu0 %2108, %v1673_v40  }
 0x606   :  { %v1333_v32 = vpop.xlane.xlu1 %1332 }
 0x607   :  { %v1334_v53 = vcvt.f32.s32 %v1333_v32  ;;  %v1960_v32 = vld [vmem:[%s3255_s2 + $0x18] sm:$0xff] }
 0x609   :  { %v1337_v37 = vadd.s32 %v1336_v7, %v1334_v53 }
 0x60a   :  { %v1318_v57 = vpop.xlane.xlu0 %1317 }
 0x60b   :  { %vm1341_vm6 = vcmp.eq.s32.totalorder %v2458_v6, %v1337_v37  ;;  %v1319_v30 = vcvt.f32.s32 %v1318_v57 }
 0x60c   :  { %v1958_v42 = vsel %vm1341_vm6, 1.0, %v2250_v17 }
 0x60d   :  { %v1393_v12 = vmul.f32 %v2956_v61, %v1958_v42  ;;  %v1322_v47 = vadd.s32 %v1321_v60, %v1319_v30  ;;  %v594_v42 = vcvt.f32.s32 %v3052_v23  ;;  %v580_v60 = vshll.u32 %v579_v28, 16 }
 0x60e   :  { %v1303_v50 = vpop.xlane.xlu1 %1302 }
 0x60f   :  { %v1397_v14 = vadd.f32 %v1393_v12, %v2803_v38  ;;  %v1304_v1 = vcvt.f32.s32 %v1303_v50  ;;  %vm1340_vm7 = vcmp.eq.s32.totalorder %v2458_v6, %v1322_v47 }
 0x610   :  { %v1288_v22 = vpop.xlane.xlu0 %1287  ;;  %v1957_v3 = vsel %vm1340_vm7, 1.0, %v2250_v17 }
 0x611   :  { %v1413_v43 = vmul.f32 %v2200_v0, %v1397_v14  ;;  %v1307_v27 = vadd.s32 %v1306_v2, %v1304_v1  ;;  %v1289_v61 = vcvt.f32.s32 %v1288_v22  ;;  %v1392_v21 = vmul.f32 %v2962_v13, %v1957_v3 }
 0x612   :  { %v595_v14 = vshll.u32 %v594_v42, 16 }
 0x613   :  { %2026 = vmatprep.subr.msk.mxu1 %vm212_vm0, %v1413_v43  ;;  %vm1339_vm8 = vcmp.eq.s32.totalorder %v2458_v6, %v1307_v27  ;;  %v1292_v38 = vadd.s32 %v1291_v58, %v1289_v61  ;;  %v1396_v24 = vadd.f32 %v1392_v21, %v2815_v16  ;;  %v2208_v16 = vpop.eup %2207  ;;  %v564_v27 = vcvt.f32.s32 %v3056_v54 }
 0x614   :  { %2027 = vmatpush3.xpose.msk.msra.mxu1 %vm212_vm0, %v1413_v43  ;;  %v1956_v52 = vsel %vm1339_vm8, 1.0, %v2250_v17  ;;  %v2210_v53 = vpop.eup %2209  ;;  %v505_v54 = vadd.f32 %v2907_v49, %v2904_v48 }
 0x615   :  { %v1391_v34 = vmul.f32 %v2968_v4, %v1956_v52  ;;  %vm1338_vm9 = vcmp.eq.s32.totalorder %v2458_v6, %v1292_v38  ;;  %v1412_v11 = vmul.f32 %v2202_v59, %v1396_v24  ;;  %v617_v4 = vmul.f32 %v2206_v36, %v2998_v8 }
 0x616   :  { %v1955_v62 = vsel %vm1338_vm9, 1.0, %v2250_v17  ;;  %v610_v37 = vmul.f32 %v2210_v53, %v3004_v35  ;;  %v565_v38 = vshll.u32 %v564_v27, 16  ;;  %v1674_v53 = vld [vmem:[%s3260_s7 + $0x18] sm:$0xff] }
 0x617   :  { %v1395_v10 = vadd.f32 %v1391_v34, %v2828_v63  ;;  %v1390_v13 = vmul.f32 %v2970_v45, %v1955_v62  ;;  %2028 = vmatprep.subr.msk.mxu1 %vm212_vm0, %v1412_v11  ;;  %v619_v63 = vsel %vm618_vm10, %v2998_v8, %v617_v4 }
 0x618   :  { %2029 = vmatpush3.xpose.msk.msra.mxu1 %vm212_vm0, %v1412_v11  ;;  %v612_v19 = vsel %vm611_vm12, %v3004_v35, %v610_v37 }
 0x619   :  { %v1394_v15 = vadd.f32 %v1390_v13, %v2836_v56  ;;  %v1411_v40 = vmul.f32 %v2204_v29, %v1395_v10  ;;  %v621_v56 = vand.u32 2147483648, %v2998_v8  ;;  %v614_v8 = vand.u32 2147483648, %v3004_v35 }
 0x61a   :  { %v549_v29 = vcvt.f32.s32 %v3059_v26 }
 0x61b   :  { %2030 = vmatprep.subr.msk.mxu1 %vm212_vm0, %v1411_v40  ;;  %v1410_v20 = vmul.f32 %v2208_v16, %v1394_v15  ;;  %v622_v45 = vsel %vm620_vm11, %v621_v56, %v619_v63  ;;  %v615_v57 = vsel %vm613_vm13, %v614_v8, %v612_v19  ;;  %v674_v16 = vld [vmem:[%s3255_s2 + $0x8] sm:$0xff]  ;;  %v1538_v63 = vld [vmem:[%s3257_s4] sm:$0xff] }
 0x61c   :  { %2031 = vmatpush3.xpose.msk.msra.mxu1 %vm212_vm0, %v1411_v40  ;;  %v638_v7 = vadd.f32 1e-08, %v622_v45  ;;  %v637_v50 = vadd.f32 1e-08, %v615_v57  ;;  %v550_v13 = vshll.u32 %v549_v29, 16  ;;  %v1544_v45 = vld [vmem:[%s3258_s5 + $0x10] sm:$0xff] }
 0x61d   :  { %2032 = vmatprep.subr.msk.mxu1 %vm212_vm0, %v1410_v20 }
 0x61e   :  { %2211 = vrcp.f32 %v638_v7  ;;  %v1672_v7 = vld [vmem:[%s3260_s7 + $0x8] sm:$0xff] }
 0x61f   :  { %2213 = vrcp.f32 %v3014_v55  ;;  %v506_v55 = vadd.f32 %v2890_v5, %v2887_v25 }
 0x620   :  { %2033 = vmatpush3.xpose.msk.msra.mxu1 %vm212_vm0, %v1410_v20  ;;  %2215 = vrcp.f32 %v3020_v39 }
 0x621   :  { %2217 = vrcp.f32 %v637_v50  ;;  %v1796_v50 = vld [vmem:[%s3261_s8] sm:$0xff] }
 0x623   :  { %2035 = vmatmul.mubr.msk.f32.vlgmr.msra.gmra.mxu1 %vm212_vm0, %v1960_v32  ;;  %v1542_v32 = vld [vmem:[%s3258_s5] sm:$0xff] }
 0x62b   :  { %v2212_v2 = vpop.eup %2211 }
 0x62c   :  { %v658_v39 = vadd.f32 %v2212_v2, %v506_v55  ;;  %v2214_v58 = vpop.eup %2213 }
 0x62d   :  { %v2216_v5 = vpop.eup %2215 }
 0x62e   :  { %2219 = vrcp.f32 %v658_v39 }
 0x633   :  { %v577_v12 = vpop.xlane.xlu0 %576 }
 0x634   :  { %v578_v44 = vcvt.f32.s32 %v577_v12  ;;  %v1539_v12 = vld [vmem:[%s3257_s4 + $0x8] sm:$0xff] }
 0x636   :  { %v581_v47 = vadd.s32 %v580_v60, %v578_v44  ;;  %v1540_v60 = vld [vmem:[%s3257_s4 + $0x10] sm:$0xff]  ;;  %v1541_v44 = vld [vmem:[%s3257_s4 + $0x18] sm:$0xff] }
 0x637   :  { %v592_v30 = vpop.xlane.xlu1 %591 }
 0x638   :  { %v593_v0 = vcvt.f32.s32 %v592_v30  ;;  %vm599_vm14 = vcmp.eq.s32.totalorder %v2458_v6, %v581_v47  ;;  %v1667_v30 = vld [vmem:[%s3259_s6] sm:$0xff] }
 0x639   :  { %v1934_v35 = vsel %vm599_vm14, 1.0, %v2250_v17  ;;  %2059 = vmatprep.mubr.msk.f32.mxu1 %vm768_vm5, %v1667_v30 }
 0x63a   :  { %v596_v1 = vadd.s32 %v595_v14, %v593_v0  ;;  %v651_v46 = vmul.f32 %v3009_v51, %v1934_v35  ;;  %v1797_v14 = vld [vmem:[%s3261_s8 + $0x8] sm:$0xff] }
 0x63c   :  { %vm600_vm15 = vcmp.eq.s32.totalorder %v2458_v6, %v596_v1  ;;  %v655_v43 = vadd.f32 %v651_v46, %v2867_v31  ;;  %v2218_v31 = vpop.eup %2217 }
 0x63d   :  { %v1935_v23 = vsel %vm600_vm15, 1.0, %v2250_v17  ;;  %v657_v34 = vadd.f32 %v2218_v31, %v505_v54  ;;  %v2220_v59 = vpop.eup %2219 }
 0x63e   :  { %v652_v22 = vmul.f32 %v3016_v9, %v1935_v23  ;;  %v671_v61 = vmul.f32 %v2214_v58, %v655_v43 }
 0x63f   :  { %2221 = vrcp.f32 %v657_v34 }
 0x640   :  { %v656_v25 = vadd.f32 %v652_v22, %v2878_v41 }
 0x642   :  { %v672_v3 = vmul.f32 %v2216_v5, %v656_v25 }
 0x643   :  { %v562_v21 = vpop.xlane.xlu1 %561 }
 0x644   :  { %v563_v52 = vcvt.f32.s32 %v562_v21  ;;  %2015 = vmatprep.subr.msk.mxu0 %vm212_vm0, %v672_v3  ;;  %v1669_v21 = vld [vmem:[%s3259_s6 + $0x10] sm:$0xff] }
 0x645   :  { %2016 = vmatpush3.xpose.msk.msra.mxu0 %vm212_vm0, %v672_v3  ;;  %v1668_v3 = vld [vmem:[%s3259_s6 + $0x8] sm:$0xff] }
 0x646   :  { %v566_v51 = vadd.s32 %v565_v38, %v563_v52  ;;  %2017 = vmatprep.subr.msk.mxu0 %vm212_vm0, %v671_v61  ;;  %v1670_v38 = vld [vmem:[%s3259_s6 + $0x18] sm:$0xff]  ;;  %v1798_v52 = vld [vmem:[%s3261_s8 + $0x10] sm:$0xff]  ;;  %s2252_s6 = smov [#allocation3]  }
 0x648   :  { %vm598_vm1 = vcmp.eq.s32.totalorder %v2458_v6, %v566_v51  ;;  %v1799_v51 = vld [vmem:[%s3261_s8 + $0x18] sm:$0xff]  ;;  %s1913_s8 = sshll.u32 %s2252_s6, 4  ;;  %s1914_s8 = int_to_ptr.vmem [resolvable:$true] %s1913_s8 }
 0x649   :  { %v1933_v9 = vsel %vm598_vm1, 1.0, %v2250_v17  ;;  %2018 = vmatpush3.xpose.msk.msra.mxu0 %vm212_vm0, %v671_v61  ;;  %s2223_s12 = scalar_lea.vmem %s1914_s8, 512  ;;  %p2228_p1 = scmp.lt.s32.totalorder %s1914_s8, %s1914_s8 }
 0x64a   :  { %v650_v41 = vmul.f32 %v2212_v2, %v1933_v9  ;;  %p2224_p0 = scmp.ne.s32.totalorder %s1914_s8, %s2223_s12  ;;  %p2229_p2 = scmp.lt.s32.totalorder %s2223_s12, %s2223_s12 }
 0x64c   :  { %v654_v24 = vadd.f32 %v650_v41, %v2901_v18  ;;  %v2222_v26 = vpop.eup %2221  ;;  %p2230_p3 = por %p2229_p2, %p2228_p1 }
 0x64e   :  { %v670_v62 = vmul.f32 %v2220_v59, %v654_v24  ;;  %p2231_p4 = pnand %p2230_p3, %p2224_p0 }
 0x650   :  { %2019 = vmatprep.subr.msk.mxu0 %vm212_vm0, %v670_v62 }
 0x651   :  { %2020 = vmatpush3.xpose.msk.msra.mxu0 %vm212_vm0, %v670_v62 }
 0x653   :  { %v547_v10 = vpop.xlane.xlu0 %546 }
 0x654   :  { %v548_v11 = vcvt.f32.s32 %v547_v10 }
 0x656   :  { %v551_v36 = vadd.s32 %v550_v13, %v548_v11 }
 0x657   :  { %v1527_v15 = vpop.permute.xlu0 %1526 }
 0x658   :  { %vm597_vm3 = vcmp.eq.s32.totalorder %v2458_v6, %v551_v36  ;;  %1532 = vst.msk [vmem:[#allocation2 + $0x10] sm:$0xff] %vm1518_vm2, %v1527_v15  ;;  %v772_v6 = vld [vmem:[%s3256_s3 + $0x8] sm:$0xff] }
 0x659   :  { %v1932_v18 = vsel %vm597_vm3, 1.0, %v2250_v17  ;;  %v1529_v17 = vpop.permute.xlu1 %1528  ;;  %774 = vst.msk [vmem:[#allocation2 + $0x18] sm:$0xff] %vm768_vm5, %v772_v6 }
 0x65a   :  { %v649_v48 = vmul.f32 %v2218_v31, %v1932_v18  ;;  %1533 = vst.msk [vmem:[#allocation2 + $0x18] sm:$0xff] %vm1518_vm2, %v1529_v17 }
 0x65c   :  { %v653_v49 = vadd.f32 %v649_v48, %v2918_v33 }
 0x65e   :  { %v669_v40 = vmul.f32 %v2222_v26, %v653_v49 }
 0x65f   :  { %v1536_v4 = vld [vmem:[#allocation2 + $0x10] sm:$0xff]  ;;  %v1564_v0 = vpop.permute.xlu0 %1563 }
 0x660   :  { %2021 = vmatprep.subr.msk.mxu0 %vm212_vm0, %v669_v40 }
 0x661   :  { %2022 = vmatpush3.xpose.msk.msra.mxu0 %vm212_vm0, %v669_v40  ;;  %v1537_v33 = vld [vmem:[#allocation2 + $0x18] sm:$0xff] }
 0x662   :  { %2037 = vmatprep.subr.mxu0 %v1537_v33 }
 0x663   :  { %v1554_v39 = vpop.permute.xlu0 %1553 }
 0x664   :  { %2024 = vmatmul.mubr.msk.f32.vlgmr.msra.gmra.mxu0 %vm212_vm0, %v674_v16 }
 0x665   :  { %2038 = vmatpush3.msra.mxu0 %v1537_v33  ;;  %2045 = vmatprep.mubr.msk.f32.mxu0 %vm768_vm5, %v1538_v63 }
 0x666   :  { %2039 = vmatprep.subr.mxu0 %v1536_v4 }
 0x667   :  { %2040 = vmatpush3.msra.mxu0 %v1536_v4  ;;  %v1678_v9 = vpop.permute.xlu0 %1677 }
 0x66b   :  { %v1688_v18 = vpop.permute.xlu0 %1687 }
 0x6e3   :  { %v2036_v20 = vpop.f32.mrf.mxu1 }
 0x6e4   :  { %1514 = vrot.lane.b32.xlu1 %v2036_v20, %s2251_s14 }
 0x6e5   :  { %v1501_v56 = vpop.f32.mrf.mxu1 }
 0x6e8   :  { %1512 = vrot.lane.b32.xlu1 %v1501_v56, %s2251_s14 }
 0x6ec   :  { %1558 = vperm.xlu1 %2110, %v1544_v45  }
 0x6f0   :  { %1548 = vperm.xlu1 %2110, %v1542_v32  }
 0x6f4   :  { %1682 = vperm.xlu1 %2110, %v1672_v7  }
 0x6f8   :  { %1692 = vperm.xlu1 %2110, %v1674_v53  }
 0x724   :  { %v2025_v37 = vpop.f32.mrf.mxu0 }
 0x725   :  { %770 = vst.msk [vmem:[#allocation2 + $0x8] sm:$0xff] %vm768_vm5, %v2025_v37 }
 0x726   :  { %v759_v19 = vpop.f32.mrf.mxu0 }
 0x727   :  { %769 = vst.msk [vmem:[#allocation2] sm:$0xff] %vm768_vm5, %v759_v19 }
 0x756   :  { %v1515_v8 = vpop.permute.xlu1 %1514 }
 0x757   :  { %1520 = vst.msk [vmem:[#allocation2 + $0x8] sm:$0xff] %vm1518_vm2, %v1515_v8 }
 0x75a   :  { %v1513_v28 = vpop.permute.xlu1 %1512 }
 0x75b   :  { %1519 = vst.msk [vmem:[#allocation2] sm:$0xff] %vm1518_vm2, %v1513_v28 }
 0x75e   :  { %v1535_v42 = vld [vmem:[#allocation2 + $0x8] sm:$0xff] }
 0x75f   :  { %2041 = vmatprep.subr.mxu0 %v1535_v42 }
 0x760   :  { %2042 = vmatpush3.msra.mxu0 %v1535_v42 }
 0x762   :  { %v1534_v57 = vld [vmem:[#allocation2] sm:$0xff] }
 0x763   :  { %2043 = vmatprep.subr.mxu0 %v1534_v57 }
 0x764   :  { %2044 = vmatpush3.msra.mxu0 %v1534_v57 }
 0x765   :  { %2046 = vmatmul.mubr.msk.f32.vlgmr.msra.gmra.mxu0 %vm768_vm5, %v1539_v12  ;;  %2065 = vmatprep.subr.mxu0 %v1535_v42 }
 0x766   :  { %2066 = vmatpush3.msra.mxu0 %v1535_v42  ;;  %2048 = vmatprep.mubr.msk.f32.mxu0 %vm768_vm5, %v1540_v60 }
 0x767   :  { %2067 = vmatprep.subr.mxu0 %v1534_v57  ;;  %v1559_v47 = vpop.permute.xlu1 %1558 }
 0x768   :  { %2068 = vmatpush3.msra.mxu0 %v1534_v57 }
 0x769   :  { %2049 = vmatmul.mubr.msk.f32.gmra.mxu0 %vm768_vm5, %v1541_v44 }
 0x76a   :  { %2069 = vmatprep.mubr.msk.f32.mxu0 %vm212_vm0, %v1796_v50 }
 0x76b   :  { %v1549_v58 = vpop.permute.xlu1 %1548 }
 0x76d   :  { %2070 = vmatmul.mubr.msk.f32.vlgmr.msra.gmra.mxu0 %vm212_vm0, %v1797_v14 }
 0x76f   :  { %v1683_v31 = vpop.permute.xlu1 %1682 }
 0x773   :  { %v1693_v59 = vpop.permute.xlu1 %1692 }
 0x825   :  { %v2047_v2 = vpop.f32.mrf.mxu0 }
 0x826   :  { %v1650_v23 = vadd.f32 %v2047_v2, %v1554_v39 }
 0x827   :  { %v1644_v1 = vpop.f32.mrf.mxu0 }
 0x828   :  { %v1645_v27 = vadd.f32 %v1644_v1, %v1549_v58  ;;  %v1664_v5 = vmax.f32 %v1650_v23, 0.0 }
 0x829   :  { %v2050_v55 = vpop.f32.mrf.mxu0 }
 0x82a   :  { %v1660_v35 = vadd.f32 %v2050_v55, %v1564_v0  ;;  %v1663_v61 = vmax.f32 %v1645_v27, 0.0 }
 0x82b   :  { %v1654_v46 = vpop.f32.mrf.mxu0 }
 0x82c   :  { %v1666_v22 = vmax.f32 %v1660_v35, 0.0  ;;  %v1655_v43 = vadd.f32 %v1654_v46, %v1559_v47 }
 0x82d   :  { %v2071_v54 = vpop.f32.mrf.mxu0 }
 0x82e   :  { %v1665_v25 = vmax.f32 %v1655_v43, 0.0  ;;  %2051 = vmatprep.subr.mxu1 %v1666_v22 }
 0x82f   :  { %2052 = vmatpush3.msra.mxu1 %v1666_v22  ;;  %v1880_v13 = vpop.f32.mrf.mxu0 }
 0x830   :  { %2053 = vmatprep.subr.mxu1 %v1665_v25 }
 0x831   :  { %2054 = vmatpush3.msra.mxu1 %v1665_v25 }
 0x832   :  { %2055 = vmatprep.subr.mxu1 %v1664_v5 }
 0x833   :  { %2056 = vmatpush3.msra.mxu1 %v1664_v5 }
 0x834   :  { %2057 = vmatprep.subr.mxu1 %v1663_v61 }
 0x835   :  { %2058 = vmatpush3.msra.mxu1 %v1663_v61 }
 0x836   :  { %2060 = vmatmul.mubr.msk.f32.vlgmr.msra.gmra.mxu1 %vm768_vm5, %v1668_v3  ;;  %2075 = vmatprep.subr.mxu1 %v1535_v42 }
 0x837   :  { %2077 = vmatpush3.msra.mxu1 %v1535_v42  ;;  %2062 = vmatprep.mubr.msk.f32.mxu1 %vm768_vm5, %v1669_v21 }
 0x838   :  { %2076 = vmatprep.subr.mxu1 %v1534_v57 }
 0x839   :  { %2078 = vmatpush3.msra.mxu1 %v1534_v57 }
 0x83a   :  { %2063 = vmatmul.mubr.msk.f32.gmra.mxu1 %vm768_vm5, %v1670_v38 }
 0x83b   :  { %2072 = vmatprep.mubr.msk.f32.mxu1 %vm212_vm0, %v1798_v52 }
 0x83e   :  { %2073 = vmatmul.mubr.msk.f32.vlgmr.msra.gmra.mxu1 %vm212_vm0, %v1799_v51 }
 0x8f6   :  { %v2061_v41 = vpop.f32.mrf.mxu1 }
 0x8f7   :  { %v1779_v24 = vadd.f32 %v2061_v41, %v1683_v31 }
 0x8f8   :  { %v1773_v34 = vpop.f32.mrf.mxu1 }
 0x8f9   :  { %v1793_v62 = vmax.f32 %v1779_v24, 0.0  ;;  %v1774_v29 = vadd.f32 %v1773_v34, %v1678_v9 }
 0x8fa   :  { %v2064_v10 = vpop.f32.mrf.mxu1 }
 0x8fb   :  { %v1792_v11 = vmax.f32 %v1774_v29, 0.0  ;;  %v1789_v36 = vadd.f32 %v2064_v10, %v1693_v59  ;;  %v1900_v15 = vadd.f32 %v2071_v54, %v1793_v62 }
 0x8fc   :  { %v1783_v48 = vpop.f32.mrf.mxu1 }
 0x8fd   :  { %v1795_v49 = vmax.f32 %v1789_v36, 0.0  ;;  %1905 = vst.msk [vmem:[#allocation3 + $0x8] sm:$0xff] %vm1903_vm4, %v1900_v15  ;;  %v1784_v26 = vadd.f32 %v1783_v48, %v1688_v18  ;;  %v1899_v40 = vadd.f32 %v1880_v13, %v1792_v11 }
 0x8fe   :  { %v2074_v16 = vpop.f32.mrf.mxu1 }
 0x8ff   :  { %v1794_v6 = vmax.f32 %v1784_v26, 0.0  ;;  %1904 = vst.msk [vmem:[#allocation3] sm:$0xff] %vm1903_vm4, %v1899_v40  ;;  %v1902_v17 = vadd.f32 %v2074_v16, %v1795_v49 }
 0x900   :  { %v1890_v33 = vpop.f32.mrf.mxu1 }
 0x901   :  { %1907 = vst.msk [vmem:[#allocation3 + $0x18] sm:$0xff] %vm1903_vm4, %v1902_v17  ;;  %v1901_v4 = vadd.f32 %v1890_v33, %v1794_v6 }
 0x903   :  { %1906 = vst.msk [vmem:[#allocation3 + $0x10] sm:$0xff] %vm1903_vm4, %v1901_v4 }
 0x904   :  { %2234 = shalt.err (!%p2231_p4)
}
 0x905   :  { %s2253_s13 = smov 128   ;;  %s2254_s15 = smov 8  }
 0x906   :  { %1919 = dma.vmem_to_hbm [thread:$0]  %s1914_s8, 512, %s3262_s9, [#allocation4], %s2253_s13, %s2253_s13, %s2254_s15  }
 0x907   :  { %2243 = dma.done.wait [#allocation4], 512  }
 0x908   :  { %2244 = vsyncadd [#allocation4], 4294966784 }
 0x909   :  { %1923 = vsyncpa [#allocation4], 1 }

</bundles_post_ra>
